<compile_context>
chip_gen: v7x
topology: tpu7x:2x2x1
jax: 0.10.0
libtpu: 0.0.40
codegen_flags: <defaults>
</compile_context>

<pallas_src>
import functools

import jax
import jax.numpy as jnp
from jax.experimental import pallas as pl
from jax.experimental.pallas import tpu as pltpu

LANE = 128  # pad every feature dim to one full vreg lane width


# ---------------------------------------------------------------------------
# Fused kernel: entire PNN forward in one pallas_call
# ---------------------------------------------------------------------------
def _pnn_kernel(num_columns, num_layers, pad, *refs):
    """refs = [x,
               (w_main, bias[, w_lat_stacked]) for each (column, layer),
               out,
               act_scratch_0 .. act_scratch_{num_layers-1}]

    act_scratch_i is (batch, num_columns*pad); column j's layer-i activation
    lives at lanes [j*pad, (j+1)*pad) — so "all previous columns' layer-i
    activations" is one contiguous, 128-aligned lane slice (zero-copy LHS for
    the single stacked lateral matmul).
    """
    x_ref = refs[0]
    idx = 1
    params = []
    for c in range(num_columns):
        col = []
        for _ in range(num_layers):
            w = refs[idx]
            b = refs[idx + 1]
            idx += 2
            wl = None
            if c > 0:
                wl = refs[idx]
                idx += 1
            col.append((w, b, wl))
        params.append(col)
    out_ref = refs[idx]
    act_refs = refs[idx + 1: idx + 1 + num_layers]

    x = x_ref[...]                                   # (batch, pad), f32
    h = x
    for c in range(num_columns):
        h = x
        for i in range(num_layers):
            w, b, wl = params[c][i]
            acc = jnp.dot(h, w[...], preferred_element_type=jnp.float32)
            if c > 0:
                # all previous columns' layer-i activations: one stacked matmul
                lat = act_refs[i][:, : c * pad]      # (batch, c*pad)
                acc = acc + jnp.dot(lat, wl[...],
                                    preferred_element_type=jnp.float32)
            acc = acc + b[...]                       # pre-summed bias (1, pad)
            h = jnp.maximum(acc, 0.0)                # ReLU (padded lanes stay 0)
            act_refs[i][:, c * pad:(c + 1) * pad] = h
    out_ref[...] = h                                 # active (last) column output


def pnn_forward_fused(packed, x, *, num_columns, num_layers, batch, pad,
                      input_size, out_size):
    """One pallas_call for the whole PNN; returns (batch, out_size)."""
    x_pad = jnp.pad(x.astype(jnp.float32), ((0, 0), (0, pad - input_size)))

    args = [x_pad]
    for c in range(num_columns):
        for i in range(num_layers):
            layer = packed[c][i]
            args.append(layer["w"])
            args.append(layer["b"])
            if c > 0:
                args.append(layer["w_lat"])

    vmem_spec = pl.BlockSpec(memory_space=pltpu.MemorySpace.VMEM)
    kernel = functools.partial(_pnn_kernel, num_columns, num_layers, pad)

    out_pad = pl.pallas_call(
        kernel,
        out_shape=jax.ShapeDtypeStruct((batch, pad), jnp.float32),
        in_specs=[vmem_spec] * len(args),
        out_specs=vmem_spec,
        scratch_shapes=[pltpu.VMEM((batch, num_columns * pad), jnp.float32)
                        for _ in range(num_layers)],
    )(*args)
    return out_pad[:, :out_size]


# ---------------------------------------------------------------------------
# Parameter construction (deterministic, mimics torch.nn.Linear default init)
# ---------------------------------------------------------------------------
def _linear_init(key, in_f, out_f):
    k = 1.0 / jnp.sqrt(jnp.float32(in_f))
    kw, kb = jax.random.split(key)
    w = jax.random.uniform(kw, (in_f, out_f), jnp.float32, -k, k)  # (in, out)
    b = jax.random.uniform(kb, (out_f,), jnp.float32, -k, k)
    return w, b


def build_pnn_params(key, input_size, hidden_sizes, output_size, num_columns,
                     lateral_connections=True):
    layer_sizes = [input_size] + list(hidden_sizes) + [output_size]
    columns = []
    for c in range(num_columns):
        col_layers = []
        for i in range(len(layer_sizes) - 1):
            key, k_main = jax.random.split(key)
            w, b = _linear_init(k_main, layer_sizes[i], layer_sizes[i + 1])
            adapters = []
            if lateral_connections:
                for _ in range(c):
                    key, k_ad = jax.random.split(key)
                    adapters.append(_linear_init(k_ad, layer_sizes[i + 1],
                                                 layer_sizes[i + 1]))
            col_layers.append({"w": w, "b": b, "adapters": adapters})
        columns.append(col_layers)
    return columns


def pack_params(columns_raw, pad=LANE):
    """Zero-pad to 128 lanes, stack adapter weights along K, pre-sum biases."""
    packed = []
    for c, col in enumerate(columns_raw):
        pcol = []
        for layer in col:
            w, b = layer["w"], layer["b"]
            in_f, out_f = w.shape
            w_pad = jnp.zeros((pad, pad), jnp.float32).at[:in_f, :out_f].set(w)
            b_sum = jnp.zeros((pad,), jnp.float32).at[:out_f].set(b)
            entry = {"w": w_pad}
            if c > 0:
                w_lat = jnp.zeros((c * pad, pad), jnp.float32)
                for j, (wa, ba) in enumerate(layer["adapters"]):
                    ia, oa = wa.shape
                    w_lat = w_lat.at[j * pad:j * pad + ia, :oa].set(wa)
                    b_sum = b_sum.at[:oa].add(ba)
                entry["w_lat"] = w_lat
            entry["b"] = b_sum.reshape(1, pad)
            pcol.append(entry)
        packed.append(pcol)
    return packed


# Pure-JAX reference for correctness checking (unpadded params).
def pnn_forward_ref(columns, x, lateral_connections=True):
    all_acts = []
    out = None
    for c, col in enumerate(columns):
        acts = []
        h = x
        for i, layer in enumerate(col):
            y = h @ layer["w"] + layer["b"]
            if lateral_connections and c > 0:
                for j in range(c):
                    wa, ba = layer["adapters"][j]
                    y = y + all_acts[j][i] @ wa + ba
            h = jnp.maximum(y, 0.0)
            acts.append(h)
        all_acts.append(acts)
        out = acts[-1]
    return out


if __name__ == "__main__":
    # ProgressiveNeuralNetwork(input_size=32, hidden_sizes=[64, 48],
    #                          output_size=16) with 3 columns added; the active
    # column is the last one (as after add_column).
    input_size, hidden_sizes, output_size = 32, [64, 48], 16
    num_columns = 3
    num_layers = len(hidden_sizes) + 1
    batch = 8

    key = jax.random.PRNGKey(0)
    k_params, k_x = jax.random.split(key)
    columns_raw = build_pnn_params(k_params, input_size, hidden_sizes,
                                   output_size, num_columns,
                                   lateral_connections=True)
    x = jax.random.normal(k_x, (batch, input_size), jnp.float32)

    packed = pack_params(columns_raw, pad=LANE)

    fwd = jax.jit(functools.partial(
        pnn_forward_fused,
        num_columns=num_columns, num_layers=num_layers,
        batch=batch, pad=LANE,
        input_size=input_size, out_size=output_size))

    out = jax.block_until_ready(fwd(packed, x))

    ref = pnn_forward_ref(columns_raw, x, lateral_connections=True)
    assert out.shape == (batch, output_size)
    assert jnp.allclose(out, ref, atol=1e-4, rtol=1e-4), "mismatch vs JAX reference"

    print("KERNEL_OK")
</pallas_src>

<mosaic_0001>
module attributes {stable_mosaic.version = 11 : i64} {
  func.func @_pnn_kernel(%arg0: memref<8x128xf32, #tpu.memory_space<vmem>>, %arg1: memref<128x128xf32, #tpu.memory_space<vmem>>, %arg2: memref<1x128xf32, #tpu.memory_space<vmem>>, %arg3: memref<128x128xf32, #tpu.memory_space<vmem>>, %arg4: memref<1x128xf32, #tpu.memory_space<vmem>>, %arg5: memref<128x128xf32, #tpu.memory_space<vmem>>, %arg6: memref<1x128xf32, #tpu.memory_space<vmem>>, %arg7: memref<128x128xf32, #tpu.memory_space<vmem>>, %arg8: memref<1x128xf32, #tpu.memory_space<vmem>>, %arg9: memref<128x128xf32, #tpu.memory_space<vmem>>, %arg10: memref<128x128xf32, #tpu.memory_space<vmem>>, %arg11: memref<1x128xf32, #tpu.memory_space<vmem>>, %arg12: memref<128x128xf32, #tpu.memory_space<vmem>>, %arg13: memref<128x128xf32, #tpu.memory_space<vmem>>, %arg14: memref<1x128xf32, #tpu.memory_space<vmem>>, %arg15: memref<128x128xf32, #tpu.memory_space<vmem>>, %arg16: memref<128x128xf32, #tpu.memory_space<vmem>>, %arg17: memref<1x128xf32, #tpu.memory_space<vmem>>, %arg18: memref<256x128xf32, #tpu.memory_space<vmem>>, %arg19: memref<128x128xf32, #tpu.memory_space<vmem>>, %arg20: memref<1x128xf32, #tpu.memory_space<vmem>>, %arg21: memref<256x128xf32, #tpu.memory_space<vmem>>, %arg22: memref<128x128xf32, #tpu.memory_space<vmem>>, %arg23: memref<1x128xf32, #tpu.memory_space<vmem>>, %arg24: memref<256x128xf32, #tpu.memory_space<vmem>>, %arg25: memref<8x128xf32, #tpu.memory_space<vmem>>, %arg26: memref<8x384xf32, #tpu.memory_space<vmem>>, %arg27: memref<8x384xf32, #tpu.memory_space<vmem>>, %arg28: memref<8x384xf32, #tpu.memory_space<vmem>>) attributes {dimension_semantics = [], scalar_prefetch = 0 : i64, scratch_operands = 3 : i64, tpu.core_type = #tpu.core_type<tc>} {
    %c0 = arith.constant 0 : index
    %c0_0 = arith.constant 0 : index
    %0 = vector.load %arg0[%c0, %c0_0] : memref<8x128xf32, #tpu.memory_space<vmem>>, vector<8x128xf32>
    %c0_1 = arith.constant 0 : index
    %c0_2 = arith.constant 0 : index
    %1 = vector.load %arg1[%c0_1, %c0_2] : memref<128x128xf32, #tpu.memory_space<vmem>>, vector<128x128xf32>
    %cst = arith.constant dense<0.000000e+00> : vector<8x128xf32>
    %2 = tpu.matmul %0, %1, %cst {dimension_numbers = #tpu.dot_dimension_numbers<[1], [0], [0], [1], [0, 0, 1, 1], [], []>} : vector<8x128xf32>, vector<128x128xf32>, vector<8x128xf32> -> vector<8x128xf32>
    %c0_3 = arith.constant 0 : index
    %c0_4 = arith.constant 0 : index
    %3 = vector.load %arg2[%c0_3, %c0_4] : memref<1x128xf32, #tpu.memory_space<vmem>>, vector<1x128xf32>
    %4 = vector.broadcast %3 : vector<1x128xf32> to vector<8x128xf32>
    %5 = arith.addf %2, %4 : vector<8x128xf32>
    %cst_5 = arith.constant 0.000000e+00 : f32
    %6 = vector.broadcast %cst_5 : f32 to vector<8x128xf32>
    %7 = arith.maximumf %5, %6 : vector<8x128xf32>
    %c0_6 = arith.constant 0 : index
    %c0_7 = arith.constant 0 : index
    %8 = vector.load %arg26[%c0_6, %c0_7] : memref<8x384xf32, #tpu.memory_space<vmem>>, vector<8x128xf32>
    tpu.vector_store %arg26[%c0_6, %c0_7], %7 {strides = array<i32>} : memref<8x384xf32, #tpu.memory_space<vmem>>, vector<8x128xf32>,
    %c0_8 = arith.constant 0 : index
    %c0_9 = arith.constant 0 : index
    %9 = vector.load %arg3[%c0_8, %c0_9] : memref<128x128xf32, #tpu.memory_space<vmem>>, vector<128x128xf32>
    %cst_10 = arith.constant dense<0.000000e+00> : vector<8x128xf32>
    %10 = tpu.matmul %7, %9, %cst_10 {dimension_numbers = #tpu.dot_dimension_numbers<[1], [0], [0], [1], [0, 0, 1, 1], [], []>} : vector<8x128xf32>, vector<128x128xf32>, vector<8x128xf32> -> vector<8x128xf32>
    %c0_11 = arith.constant 0 : index
    %c0_12 = arith.constant 0 : index
    %11 = vector.load %arg4[%c0_11, %c0_12] : memref<1x128xf32, #tpu.memory_space<vmem>>, vector<1x128xf32>
    %12 = vector.broadcast %11 : vector<1x128xf32> to vector<8x128xf32>
    %13 = arith.addf %10, %12 : vector<8x128xf32>
    %cst_13 = arith.constant 0.000000e+00 : f32
    %14 = vector.broadcast %cst_13 : f32 to vector<8x128xf32>
    %15 = arith.maximumf %13, %14 : vector<8x128xf32>
    %c0_14 = arith.constant 0 : index
    %c0_15 = arith.constant 0 : index
    %16 = vector.load %arg27[%c0_14, %c0_15] : memref<8x384xf32, #tpu.memory_space<vmem>>, vector<8x128xf32>
    tpu.vector_store %arg27[%c0_14, %c0_15], %15 {strides = array<i32>} : memref<8x384xf32, #tpu.memory_space<vmem>>, vector<8x128xf32>,
    %c0_16 = arith.constant 0 : index
    %c0_17 = arith.constant 0 : index
    %17 = vector.load %arg5[%c0_16, %c0_17] : memref<128x128xf32, #tpu.memory_space<vmem>>, vector<128x128xf32>
    %cst_18 = arith.constant dense<0.000000e+00> : vector<8x128xf32>
    %18 = tpu.matmul %15, %17, %cst_18 {dimension_numbers = #tpu.dot_dimension_numbers<[1], [0], [0], [1], [0, 0, 1, 1], [], []>} : vector<8x128xf32>, vector<128x128xf32>, vector<8x128xf32> -> vector<8x128xf32>
    %c0_19 = arith.constant 0 : index
    %c0_20 = arith.constant 0 : index
    %19 = vector.load %arg6[%c0_19, %c0_20] : memref<1x128xf32, #tpu.memory_space<vmem>>, vector<1x128xf32>
    %20 = vector.broadcast %19 : vector<1x128xf32> to vector<8x128xf32>
    %21 = arith.addf %18, %20 : vector<8x128xf32>
    %cst_21 = arith.constant 0.000000e+00 : f32
    %22 = vector.broadcast %cst_21 : f32 to vector<8x128xf32>
    %23 = arith.maximumf %21, %22 : vector<8x128xf32>
    %c0_22 = arith.constant 0 : index
    %c0_23 = arith.constant 0 : index
    %24 = vector.load %arg28[%c0_22, %c0_23] : memref<8x384xf32, #tpu.memory_space<vmem>>, vector<8x128xf32>
    tpu.vector_store %arg28[%c0_22, %c0_23], %23 {strides = array<i32>} : memref<8x384xf32, #tpu.memory_space<vmem>>, vector<8x128xf32>,
    %c0_24 = arith.constant 0 : index
    %c0_25 = arith.constant 0 : index
    %25 = vector.load %arg7[%c0_24, %c0_25] : memref<128x128xf32, #tpu.memory_space<vmem>>, vector<128x128xf32>
    %cst_26 = arith.constant dense<0.000000e+00> : vector<8x128xf32>
    %26 = tpu.matmul %0, %25, %cst_26 {dimension_numbers = #tpu.dot_dimension_numbers<[1], [0], [0], [1], [0, 0, 1, 1], [], []>} : vector<8x128xf32>, vector<128x128xf32>, vector<8x128xf32> -> vector<8x128xf32>
    %c0_27 = arith.constant 0 : index
    %c0_28 = arith.constant 0 : index
    %27 = vector.load %arg26[%c0_27, %c0_28] : memref<8x384xf32, #tpu.memory_space<vmem>>, vector<8x128xf32>
    %c0_29 = arith.constant 0 : index
    %c0_30 = arith.constant 0 : index
    %28 = vector.load %arg9[%c0_29, %c0_30] : memref<128x128xf32, #tpu.memory_space<vmem>>, vector<128x128xf32>
    %cst_31 = arith.constant dense<0.000000e+00> : vector<8x128xf32>
    %29 = tpu.matmul %27, %28, %cst_31 {dimension_numbers = #tpu.dot_dimension_numbers<[1], [0], [0], [1], [0, 0, 1, 1], [], []>} : vector<8x128xf32>, vector<128x128xf32>, vector<8x128xf32> -> vector<8x128xf32>
    %30 = arith.addf %26, %29 : vector<8x128xf32>
    %c0_32 = arith.constant 0 : index
    %c0_33 = arith.constant 0 : index
    %31 = vector.load %arg8[%c0_32, %c0_33] : memref<1x128xf32, #tpu.memory_space<vmem>>, vector<1x128xf32>
    %32 = vector.broadcast %31 : vector<1x128xf32> to vector<8x128xf32>
    %33 = arith.addf %30, %32 : vector<8x128xf32>
    %cst_34 = arith.constant 0.000000e+00 : f32
    %34 = vector.broadcast %cst_34 : f32 to vector<8x128xf32>
    %35 = arith.maximumf %33, %34 : vector<8x128xf32>
    %c0_35 = arith.constant 0 : index
    %c128 = arith.constant 128 : index
    %36 = vector.load %arg26[%c0_35, %c128] : memref<8x384xf32, #tpu.memory_space<vmem>>, vector<8x128xf32>
    tpu.vector_store %arg26[%c0_35, %c128], %35 {strides = array<i32>} : memref<8x384xf32, #tpu.memory_space<vmem>>, vector<8x128xf32>,
    %c0_36 = arith.constant 0 : index
    %c0_37 = arith.constant 0 : index
    %37 = vector.load %arg10[%c0_36, %c0_37] : memref<128x128xf32, #tpu.memory_space<vmem>>, vector<128x128xf32>
    %cst_38 = arith.constant dense<0.000000e+00> : vector<8x128xf32>
    %38 = tpu.matmul %35, %37, %cst_38 {dimension_numbers = #tpu.dot_dimension_numbers<[1], [0], [0], [1], [0, 0, 1, 1], [], []>} : vector<8x128xf32>, vector<128x128xf32>, vector<8x128xf32> -> vector<8x128xf32>
    %c0_39 = arith.constant 0 : index
    %c0_40 = arith.constant 0 : index
    %39 = vector.load %arg27[%c0_39, %c0_40] : memref<8x384xf32, #tpu.memory_space<vmem>>, vector<8x128xf32>
    %c0_41 = arith.constant 0 : index
    %c0_42 = arith.constant 0 : index
    %40 = vector.load %arg12[%c0_41, %c0_42] : memref<128x128xf32, #tpu.memory_space<vmem>>, vector<128x128xf32>
    %cst_43 = arith.constant dense<0.000000e+00> : vector<8x128xf32>
    %41 = tpu.matmul %39, %40, %cst_43 {dimension_numbers = #tpu.dot_dimension_numbers<[1], [0], [0], [1], [0, 0, 1, 1], [], []>} : vector<8x128xf32>, vector<128x128xf32>, vector<8x128xf32> -> vector<8x128xf32>
    %42 = arith.addf %38, %41 : vector<8x128xf32>
    %c0_44 = arith.constant 0 : index
    %c0_45 = arith.constant 0 : index
    %43 = vector.load %arg11[%c0_44, %c0_45] : memref<1x128xf32, #tpu.memory_space<vmem>>, vector<1x128xf32>
    %44 = vector.broadcast %43 : vector<1x128xf32> to vector<8x128xf32>
    %45 = arith.addf %42, %44 : vector<8x128xf32>
    %cst_46 = arith.constant 0.000000e+00 : f32
    %46 = vector.broadcast %cst_46 : f32 to vector<8x128xf32>
    %47 = arith.maximumf %45, %46 : vector<8x128xf32>
    %c0_47 = arith.constant 0 : index
    %c128_48 = arith.constant 128 : index
    %48 = vector.load %arg27[%c0_47, %c128_48] : memref<8x384xf32, #tpu.memory_space<vmem>>, vector<8x128xf32>
    tpu.vector_store %arg27[%c0_47, %c128_48], %47 {strides = array<i32>} : memref<8x384xf32, #tpu.memory_space<vmem>>, vector<8x128xf32>,
    %c0_49 = arith.constant 0 : index
    %c0_50 = arith.constant 0 : index
    %49 = vector.load %arg13[%c0_49, %c0_50] : memref<128x128xf32, #tpu.memory_space<vmem>>, vector<128x128xf32>
    %cst_51 = arith.constant dense<0.000000e+00> : vector<8x128xf32>
    %50 = tpu.matmul %47, %49, %cst_51 {dimension_numbers = #tpu.dot_dimension_numbers<[1], [0], [0], [1], [0, 0, 1, 1], [], []>} : vector<8x128xf32>, vector<128x128xf32>, vector<8x128xf32> -> vector<8x128xf32>
    %c0_52 = arith.constant 0 : index
    %c0_53 = arith.constant 0 : index
    %51 = vector.load %arg28[%c0_52, %c0_53] : memref<8x384xf32, #tpu.memory_space<vmem>>, vector<8x128xf32>
    %c0_54 = arith.constant 0 : index
    %c0_55 = arith.constant 0 : index
    %52 = vector.load %arg15[%c0_54, %c0_55] : memref<128x128xf32, #tpu.memory_space<vmem>>, vector<128x128xf32>
    %cst_56 = arith.constant dense<0.000000e+00> : vector<8x128xf32>
    %53 = tpu.matmul %51, %52, %cst_56 {dimension_numbers = #tpu.dot_dimension_numbers<[1], [0], [0], [1], [0, 0, 1, 1], [], []>} : vector<8x128xf32>, vector<128x128xf32>, vector<8x128xf32> -> vector<8x128xf32>
    %54 = arith.addf %50, %53 : vector<8x128xf32>
    %c0_57 = arith.constant 0 : index
    %c0_58 = arith.constant 0 : index
    %55 = vector.load %arg14[%c0_57, %c0_58] : memref<1x128xf32, #tpu.memory_space<vmem>>, vector<1x128xf32>
    %56 = vector.broadcast %55 : vector<1x128xf32> to vector<8x128xf32>
    %57 = arith.addf %54, %56 : vector<8x128xf32>
    %cst_59 = arith.constant 0.000000e+00 : f32
    %58 = vector.broadcast %cst_59 : f32 to vector<8x128xf32>
    %59 = arith.maximumf %57, %58 : vector<8x128xf32>
    %c0_60 = arith.constant 0 : index
    %c128_61 = arith.constant 128 : index
    %60 = vector.load %arg28[%c0_60, %c128_61] : memref<8x384xf32, #tpu.memory_space<vmem>>, vector<8x128xf32>
    tpu.vector_store %arg28[%c0_60, %c128_61], %59 {strides = array<i32>} : memref<8x384xf32, #tpu.memory_space<vmem>>, vector<8x128xf32>,
    %c0_62 = arith.constant 0 : index
    %c0_63 = arith.constant 0 : index
    %61 = vector.load %arg16[%c0_62, %c0_63] : memref<128x128xf32, #tpu.memory_space<vmem>>, vector<128x128xf32>
    %cst_64 = arith.constant dense<0.000000e+00> : vector<8x128xf32>
    %62 = tpu.matmul %0, %61, %cst_64 {dimension_numbers = #tpu.dot_dimension_numbers<[1], [0], [0], [1], [0, 0, 1, 1], [], []>} : vector<8x128xf32>, vector<128x128xf32>, vector<8x128xf32> -> vector<8x128xf32>
    %c0_65 = arith.constant 0 : index
    %c0_66 = arith.constant 0 : index
    %63 = vector.load %arg26[%c0_65, %c0_66] : memref<8x384xf32, #tpu.memory_space<vmem>>, vector<8x256xf32>
    %c0_67 = arith.constant 0 : index
    %c0_68 = arith.constant 0 : index
    %64 = vector.load %arg18[%c0_67, %c0_68] : memref<256x128xf32, #tpu.memory_space<vmem>>, vector<256x128xf32>
    %cst_69 = arith.constant dense<0.000000e+00> : vector<8x128xf32>
    %65 = tpu.matmul %63, %64, %cst_69 {dimension_numbers = #tpu.dot_dimension_numbers<[1], [0], [0], [1], [0, 0, 1, 1], [], []>} : vector<8x256xf32>, vector<256x128xf32>, vector<8x128xf32> -> vector<8x128xf32>
    %66 = arith.addf %62, %65 : vector<8x128xf32>
    %c0_70 = arith.constant 0 : index
    %c0_71 = arith.constant 0 : index
    %67 = vector.load %arg17[%c0_70, %c0_71] : memref<1x128xf32, #tpu.memory_space<vmem>>, vector<1x128xf32>
    %68 = vector.broadcast %67 : vector<1x128xf32> to vector<8x128xf32>
    %69 = arith.addf %66, %68 : vector<8x128xf32>
    %cst_72 = arith.constant 0.000000e+00 : f32
    %70 = vector.broadcast %cst_72 : f32 to vector<8x128xf32>
    %71 = arith.maximumf %69, %70 : vector<8x128xf32>
    %c0_73 = arith.constant 0 : index
    %c256 = arith.constant 256 : index
    %72 = vector.load %arg26[%c0_73, %c256] : memref<8x384xf32, #tpu.memory_space<vmem>>, vector<8x128xf32>
    tpu.vector_store %arg26[%c0_73, %c256], %71 {strides = array<i32>} : memref<8x384xf32, #tpu.memory_space<vmem>>, vector<8x128xf32>,
    %c0_74 = arith.constant 0 : index
    %c0_75 = arith.constant 0 : index
    %73 = vector.load %arg19[%c0_74, %c0_75] : memref<128x128xf32, #tpu.memory_space<vmem>>, vector<128x128xf32>
    %cst_76 = arith.constant dense<0.000000e+00> : vector<8x128xf32>
    %74 = tpu.matmul %71, %73, %cst_76 {dimension_numbers = #tpu.dot_dimension_numbers<[1], [0], [0], [1], [0, 0, 1, 1], [], []>} : vector<8x128xf32>, vector<128x128xf32>, vector<8x128xf32> -> vector<8x128xf32>
    %c0_77 = arith.constant 0 : index
    %c0_78 = arith.constant 0 : index
    %75 = vector.load %arg27[%c0_77, %c0_78] : memref<8x384xf32, #tpu.memory_space<vmem>>, vector<8x256xf32>
    %c0_79 = arith.constant 0 : index
    %c0_80 = arith.constant 0 : index
    %76 = vector.load %arg21[%c0_79, %c0_80] : memref<256x128xf32, #tpu.memory_space<vmem>>, vector<256x128xf32>
    %cst_81 = arith.constant dense<0.000000e+00> : vector<8x128xf32>
    %77 = tpu.matmul %75, %76, %cst_81 {dimension_numbers = #tpu.dot_dimension_numbers<[1], [0], [0], [1], [0, 0, 1, 1], [], []>} : vector<8x256xf32>, vector<256x128xf32>, vector<8x128xf32> -> vector<8x128xf32>
    %78 = arith.addf %74, %77 : vector<8x128xf32>
    %c0_82 = arith.constant 0 : index
    %c0_83 = arith.constant 0 : index
    %79 = vector.load %arg20[%c0_82, %c0_83] : memref<1x128xf32, #tpu.memory_space<vmem>>, vector<1x128xf32>
    %80 = vector.broadcast %79 : vector<1x128xf32> to vector<8x128xf32>
    %81 = arith.addf %78, %80 : vector<8x128xf32>
    %cst_84 = arith.constant 0.000000e+00 : f32
    %82 = vector.broadcast %cst_84 : f32 to vector<8x128xf32>
    %83 = arith.maximumf %81, %82 : vector<8x128xf32>
    %c0_85 = arith.constant 0 : index
    %c256_86 = arith.constant 256 : index
    %84 = vector.load %arg27[%c0_85, %c256_86] : memref<8x384xf32, #tpu.memory_space<vmem>>, vector<8x128xf32>
    tpu.vector_store %arg27[%c0_85, %c256_86], %83 {strides = array<i32>} : memref<8x384xf32, #tpu.memory_space<vmem>>, vector<8x128xf32>,
    %c0_87 = arith.constant 0 : index
    %c0_88 = arith.constant 0 : index
    %85 = vector.load %arg22[%c0_87, %c0_88] : memref<128x128xf32, #tpu.memory_space<vmem>>, vector<128x128xf32>
    %cst_89 = arith.constant dense<0.000000e+00> : vector<8x128xf32>
    %86 = tpu.matmul %83, %85, %cst_89 {dimension_numbers = #tpu.dot_dimension_numbers<[1], [0], [0], [1], [0, 0, 1, 1], [], []>} : vector<8x128xf32>, vector<128x128xf32>, vector<8x128xf32> -> vector<8x128xf32>
    %c0_90 = arith.constant 0 : index
    %c0_91 = arith.constant 0 : index
    %87 = vector.load %arg28[%c0_90, %c0_91] : memref<8x384xf32, #tpu.memory_space<vmem>>, vector<8x256xf32>
    %c0_92 = arith.constant 0 : index
    %c0_93 = arith.constant 0 : index
    %88 = vector.load %arg24[%c0_92, %c0_93] : memref<256x128xf32, #tpu.memory_space<vmem>>, vector<256x128xf32>
    %cst_94 = arith.constant dense<0.000000e+00> : vector<8x128xf32>
    %89 = tpu.matmul %87, %88, %cst_94 {dimension_numbers = #tpu.dot_dimension_numbers<[1], [0], [0], [1], [0, 0, 1, 1], [], []>} : vector<8x256xf32>, vector<256x128xf32>, vector<8x128xf32> -> vector<8x128xf32>
    %90 = arith.addf %86, %89 : vector<8x128xf32>
    %c0_95 = arith.constant 0 : index
    %c0_96 = arith.constant 0 : index
    %91 = vector.load %arg23[%c0_95, %c0_96] : memref<1x128xf32, #tpu.memory_space<vmem>>, vector<1x128xf32>
    %92 = vector.broadcast %91 : vector<1x128xf32> to vector<8x128xf32>
    %93 = arith.addf %90, %92 : vector<8x128xf32>
    %cst_97 = arith.constant 0.000000e+00 : f32
    %94 = vector.broadcast %cst_97 : f32 to vector<8x128xf32>
    %95 = arith.maximumf %93, %94 : vector<8x128xf32>
    %c0_98 = arith.constant 0 : index
    %c256_99 = arith.constant 256 : index
    %96 = vector.load %arg28[%c0_98, %c256_99] : memref<8x384xf32, #tpu.memory_space<vmem>>, vector<8x128xf32>
    tpu.vector_store %arg28[%c0_98, %c256_99], %95 {strides = array<i32>} : memref<8x384xf32, #tpu.memory_space<vmem>>, vector<8x128xf32>,
    %c0_100 = arith.constant 0 : index
    %c0_101 = arith.constant 0 : index
    %97 = vector.load %arg25[%c0_100, %c0_101] : memref<8x128xf32, #tpu.memory_space<vmem>>, vector<8x128xf32>
    tpu.vector_store %arg25[%c0_100, %c0_101], %95 {strides = array<i32>} : memref<8x128xf32, #tpu.memory_space<vmem>>, vector<8x128xf32>,
    return
  }
}

</mosaic_0001>

<bundles_post_ra>
// kernel: pnn_forward_fused.1
= control target key start
LH: loop header
LB: loop body
LE: loop exit
PB: predicated region body
PF: predicated region fallthrough
CT: control target
= control target key end

     0   :  { %s3879_s0 = inlined_call_operand.vmem [shape: f32[8,128], index: 0, kind: input, shape index: {}]   ;;  %s3880_s1 = inlined_call_operand.hbm [shape: f32[128,128], index: 1, kind: input, shape index: {}]   ;;  %s3881_s2 = inlined_call_operand.vmem [shape: f32[1,128], index: 2, kind: input, shape index: {}]   ;;  %s3882_s3 = inlined_call_operand.hbm [shape: f32[128,128], index: 3, kind: input, shape index: {}]   ;;  %s3883_s4 = inlined_call_operand.vmem [shape: f32[1,128], index: 4, kind: input, shape index: {}]   ;;  %s3884_s5 = inlined_call_operand.hbm [shape: f32[128,128], index: 5, kind: input, shape index: {}]   ;;  %s3885_s6 = inlined_call_operand.vmem [shape: f32[1,128], index: 6, kind: input, shape index: {}]   ;;  %s3886_s7 = inlined_call_operand.hbm [shape: f32[128,128], index: 7, kind: input, shape index: {}]   ;;  %s3887_s8 = inlined_call_operand.vmem [shape: f32[1,128], index: 8, kind: input, shape index: {}]   ;;  %s3888_s9 = inlined_call_operand.hbm [shape: f32[128,128], index: 9, kind: input, shape index: {}]   ;;  %s3889_s10 = inlined_call_operand.hbm [shape: f32[128,128], index: 10, kind: input, shape index: {}]   ;;  %s3890_s11 = inlined_call_operand.vmem [shape: f32[1,128], index: 11, kind: input, shape index: {}]   ;;  %s3891_s12 = inlined_call_operand.hbm [shape: f32[128,128], index: 12, kind: input, shape index: {}]   ;;  %s3892_s13 = inlined_call_operand.hbm [shape: f32[128,128], index: 13, kind: input, shape index: {}]   ;;  %s3893_s14 = inlined_call_operand.vmem [shape: f32[1,128], index: 14, kind: input, shape index: {}]   ;;  %s3894_s15 = inlined_call_operand.hbm [shape: f32[128,128], index: 15, kind: input, shape index: {}]   ;;  %s3895_s16 = inlined_call_operand.hbm [shape: f32[128,128], index: 16, kind: input, shape index: {}]   ;;  %s3896_s17 = inlined_call_operand.vmem [shape: f32[1,128], index: 17, kind: input, shape index: {}]   ;;  %s3897_s18 = inlined_call_operand.hbm [shape: f32[256,128], index: 18, kind: input, shape index: {}]   ;;  %s3898_s19 = inlined_call_operand.hbm [shape: f32[128,128], index: 19, kind: input, shape index: {}]   ;;  %s3899_s20 = inlined_call_operand.vmem [shape: f32[1,128], index: 20, kind: input, shape index: {}]   ;;  %s3900_s21 = inlined_call_operand.hbm [shape: f32[256,128], index: 21, kind: input, shape index: {}]   ;;  %s3901_s22 = inlined_call_operand.hbm [shape: f32[128,128], index: 22, kind: input, shape index: {}]   ;;  %s3902_s23 = inlined_call_operand.vmem [shape: f32[1,128], index: 23, kind: input, shape index: {}]   ;;  %s3903_s24 = inlined_call_operand.hbm [shape: f32[256,128], index: 24, kind: input, shape index: {}]   ;;  %s3904_s25 = inlined_call_operand.hbm [shape: f32[8,128], index: 25, kind: output, shape index: {}]  }
   0x1   :  { %3912 = sst [smem:[#allocation39_spill]] %s3879_s0 }
   0x2   :  { %3913 = sst [smem:[#allocation40_spill]] %s3880_s1 }
   0x3   :  { %3914 = sst [smem:[#allocation41_spill]] %s3881_s2 }
   0x4   :  { %3915 = sst [smem:[#allocation42_spill]] %s3882_s3 }
   0x5   :  { %3916 = sst [smem:[#allocation43_spill]] %s3883_s4 }
   0x6   :  { %3917 = sst [smem:[#allocation44_spill]] %s3884_s5 }
   0x7   :  { %3918 = sst [smem:[#allocation45_spill]] %s3885_s6 }
   0x8   :  { %3919 = sst [smem:[#allocation46_spill]] %s3886_s7 }
   0x9   :  { %3920 = sst [smem:[#allocation47_spill]] %s3887_s8 }
   0xa   :  { %3921 = sst [smem:[#allocation48_spill]] %s3888_s9 }
   0xb   :  { %3922 = sst [smem:[#allocation49_spill]] %s3902_s23 }
   0xc   :  { %3923 = sst [smem:[#allocation50_spill]] %s3904_s25 }
   0xd   :  { %30 = vsyncpa [#allocation6], 0 }
   0xe   :  { %31 = vsyncpa [#allocation9], 0 }
   0xf   :  { %32 = vsyncpa [#allocation12], 0 }
  0x10   :  { %33 = vsyncpa [#allocation15], 0 }
  0x11   :  { %34 = vsyncpa [#allocation18], 0 }
  0x12   :  { %35 = vsyncpa [#allocation21], 0 }
  0x13   :  { %36 = vsyncpa [#allocation24], 0 }
  0x14   :  { %37 = vsyncpa [#allocation27], 0 }
  0x15   :  { %38 = vsyncpa [#allocation7], 0  ;;  %s3256_s29 = smov [#allocation8]   ;;  %s3257_s6 = smov [#allocation11]  }
  0x16   :  { %s60_s2 = sshll.u32 %s3256_s29, 4  ;;  %s88_s30 = sshll.u32 %s3257_s6, 4  ;;  %s61_s2 = int_to_ptr.vmem [resolvable:$true] %s60_s2  ;;  %s3407_s30 = int_to_ptr.vmem [resolvable:$true] %s88_s30 }
  0x17   :  { %s3924_s26 = sld [smem:[#allocation42_spill]] }
  0x1d   :  { %s2886_s1 = scalar_lea.hbm %s3924_s26, 2048 }
  0x1e   :  { %p2887_p0 = scmp.ne.s32.totalorder %s3924_s26, %s2886_s1  ;;  %p2890_p1 = scmp.lt.u32.totalorder %s2886_s1, %s3924_s26 }
  0x20   :  { %p2892_p2 = pnand %p2890_p1, %p2887_p0 }
  0x22   :  { %2895 = shalt.err (!%p2892_p2)
}
  0x23   :  { %s2896_s9 = scalar_lea.vmem %s61_s2, 2048  ;;  %p2901_p4 = scmp.lt.s32.totalorder %s61_s2, %s61_s2 }
  0x24   :  { %p2897_p3 = scmp.ne.s32.totalorder %s61_s2, %s2896_s9  ;;  %p2902_p5 = scmp.lt.s32.totalorder %s2896_s9, %s2896_s9 }
  0x26   :  { %p2903_p6 = por %p2902_p5, %p2901_p4 }
  0x28   :  { %p2904_p7 = pnand %p2903_p6, %p2897_p3 }
  0x2a   :  { %2907 = shalt.err (!%p2904_p7)
}
  0x2b   :  { %s3258_s5 = smov 128   ;;  %s3259_s0 = smov 8  }
  0x2c   :  { %66 = dma.hbm_to_vmem [thread:$0]  %s3924_s26, 2048, %s61_s2, [#allocation9], %s3258_s5, %s3258_s5, %s3259_s0  }
  0x2d   :  { %s3925_s1 = sld [smem:[#allocation46_spill]] }
  0x33   :  { %s2908_s8 = scalar_lea.hbm %s3925_s1, 2048 }
  0x34   :  { %p2909_p8 = scmp.ne.s32.totalorder %s3925_s1, %s2908_s8  ;;  %p2912_p9 = scmp.lt.u32.totalorder %s2908_s8, %s3925_s1 }
  0x36   :  { %p2914_p10 = pnand %p2912_p9, %p2909_p8 }
  0x38   :  { %2917 = shalt.err (!%p2914_p10)
}
  0x39   :  { %s2918_s25 = scalar_lea.vmem %s3407_s30, 2048  ;;  %p2923_p12 = scmp.lt.s32.totalorder %s3407_s30, %s3407_s30 }
  0x3a   :  { %p2919_p11 = scmp.ne.s32.totalorder %s3407_s30, %s2918_s25  ;;  %p2924_p13 = scmp.lt.s32.totalorder %s2918_s25, %s2918_s25 }
  0x3c   :  { %p2925_p0 = por %p2924_p13, %p2923_p12 }
  0x3e   :  { %p2926_p1 = pnand %p2925_p0, %p2919_p11 }
  0x40   :  { %2929 = shalt.err (!%p2926_p1)
}
  0x41   :  { %94 = dma.hbm_to_vmem [thread:$0]  %s3925_s1, 2048, %s3407_s30, [#allocation12], %s3258_s5, %s3258_s5, %s3259_s0  }
  0x42   :  { %s3260_s29 = smov [#allocation14]   ;;  %s3261_s7 = smov [#allocation17]  }
  0x43   :  { %s114_s6 = sshll.u32 %s3260_s29, 4  ;;  %s140_s3 = sshll.u32 %s3261_s7, 4  ;;  %s115_s6 = int_to_ptr.vmem [resolvable:$true] %s114_s6  ;;  %s3444_s3 = int_to_ptr.vmem [resolvable:$true] %s140_s3 }
  0x44   :  { %s2930_s27 = scalar_lea.hbm %s3889_s10, 2048 }
  0x45   :  { %p2931_p2 = scmp.ne.s32.totalorder %s3889_s10, %s2930_s27  ;;  %p2934_p3 = scmp.lt.u32.totalorder %s2930_s27, %s3889_s10 }
  0x47   :  { %p2936_p4 = pnand %p2934_p3, %p2931_p2 }
  0x49   :  { %2939 = shalt.err (!%p2936_p4)
}
  0x4a   :  { %s2940_s30 = scalar_lea.vmem %s115_s6, 2048  ;;  %p2945_p6 = scmp.lt.s32.totalorder %s115_s6, %s115_s6 }
  0x4b   :  { %p2941_p5 = scmp.ne.s32.totalorder %s115_s6, %s2940_s30  ;;  %p2946_p7 = scmp.lt.s32.totalorder %s2940_s30, %s2940_s30 }
  0x4d   :  { %p2947_p8 = por %p2946_p7, %p2945_p6 }
  0x4f   :  { %p2948_p9 = pnand %p2947_p8, %p2941_p5 }
  0x51   :  { %2951 = shalt.err (!%p2948_p9)
}
  0x52   :  { %120 = dma.hbm_to_vmem [thread:$0]  %s3889_s10, 2048, %s115_s6, [#allocation15], %s3258_s5, %s3258_s5, %s3259_s0  }
  0x53   :  { %s2952_s23 = scalar_lea.hbm %s3892_s13, 2048 }
  0x54   :  { %p2953_p10 = scmp.ne.s32.totalorder %s3892_s13, %s2952_s23  ;;  %p2956_p11 = scmp.lt.u32.totalorder %s2952_s23, %s3892_s13 }
  0x56   :  { %p2958_p12 = pnand %p2956_p11, %p2953_p10 }
  0x58   :  { %2961 = shalt.err (!%p2958_p12)
}
  0x59   :  { %s2962_s4 = scalar_lea.vmem %s3444_s3, 2048  ;;  %p2967_p0 = scmp.lt.s32.totalorder %s3444_s3, %s3444_s3 }
  0x5a   :  { %p2963_p13 = scmp.ne.s32.totalorder %s3444_s3, %s2962_s4  ;;  %p2968_p1 = scmp.lt.s32.totalorder %s2962_s4, %s2962_s4 }
  0x5c   :  { %p2969_p2 = por %p2968_p1, %p2967_p0 }
  0x5e   :  { %p2970_p3 = pnand %p2969_p2, %p2963_p13 }
  0x60   :  { %2973 = shalt.err (!%p2970_p3)
}
  0x61   :  { %146 = dma.hbm_to_vmem [thread:$0]  %s3892_s13, 2048, %s3444_s3, [#allocation18], %s3258_s5, %s3258_s5, %s3259_s0  }
  0x62   :  { %s3262_s28 = smov [#allocation20]   ;;  %s3263_s30 = smov [#allocation23]  }
  0x63   :  { %s166_s9 = sshll.u32 %s3262_s28, 4  ;;  %s192_s1 = sshll.u32 %s3263_s30, 4  ;;  %s167_s9 = int_to_ptr.vmem [resolvable:$true] %s166_s9  ;;  %s3481_s1 = int_to_ptr.vmem [resolvable:$true] %s192_s1 }
  0x64   :  { %s2974_s29 = scalar_lea.hbm %s3895_s16, 2048 }
  0x65   :  { %p2975_p4 = scmp.ne.s32.totalorder %s3895_s16, %s2974_s29  ;;  %p2978_p5 = scmp.lt.u32.totalorder %s2974_s29, %s3895_s16 }
  0x67   :  { %p2980_p6 = pnand %p2978_p5, %p2975_p4 }
  0x69   :  { %2983 = shalt.err (!%p2980_p6)
}
  0x6a   :  { %s2984_s13 = scalar_lea.vmem %s167_s9, 2048  ;;  %p2989_p8 = scmp.lt.s32.totalorder %s167_s9, %s167_s9 }
  0x6b   :  { %p2985_p7 = scmp.ne.s32.totalorder %s167_s9, %s2984_s13  ;;  %p2990_p9 = scmp.lt.s32.totalorder %s2984_s13, %s2984_s13 }
  0x6d   :  { %p2991_p10 = por %p2990_p9, %p2989_p8 }
  0x6f   :  { %p2992_p11 = pnand %p2991_p10, %p2985_p7 }
  0x71   :  { %2995 = shalt.err (!%p2992_p11)
}
  0x72   :  { %172 = dma.hbm_to_vmem [thread:$0]  %s3895_s16, 2048, %s167_s9, [#allocation21], %s3258_s5, %s3258_s5, %s3259_s0  }
  0x73   :  { %s2996_s6 = scalar_lea.hbm %s3898_s19, 2048 }
  0x74   :  { %p2997_p12 = scmp.ne.s32.totalorder %s3898_s19, %s2996_s6  ;;  %p3000_p13 = scmp.lt.u32.totalorder %s2996_s6, %s3898_s19 }
  0x76   :  { %p3002_p0 = pnand %p3000_p13, %p2997_p12 }
  0x78   :  { %3005 = shalt.err (!%p3002_p0)
}
  0x79   :  { %s3006_s29 = scalar_lea.vmem %s3481_s1, 2048  ;;  %p3011_p2 = scmp.lt.s32.totalorder %s3481_s1, %s3481_s1 }
  0x7a   :  { %p3007_p1 = scmp.ne.s32.totalorder %s3481_s1, %s3006_s29  ;;  %p3012_p3 = scmp.lt.s32.totalorder %s3006_s29, %s3006_s29 }
  0x7c   :  { %p3013_p4 = por %p3012_p3, %p3011_p2 }
  0x7e   :  { %p3014_p5 = pnand %p3013_p4, %p3007_p1 }
  0x80   :  { %3017 = shalt.err (!%p3014_p5)
}
  0x81   :  { %198 = dma.hbm_to_vmem [thread:$0]  %s3898_s19, 2048, %s3481_s1, [#allocation24], %s3258_s5, %s3258_s5, %s3259_s0  }
  0x82   :  { %s3264_s23 = smov [#allocation26]   ;;  %s3265_s8 = smov [#allocation5]  }
  0x83   :  { %s218_s7 = sshll.u32 %s3264_s23, 4  ;;  %s46_s25 = sshll.u32 %s3265_s8, 4  ;;  %s219_s7 = int_to_ptr.vmem [resolvable:$true] %s218_s7  ;;  %s3518_s25 = int_to_ptr.vmem [resolvable:$true] %s46_s25 }
  0x84   :  { %s3018_s27 = scalar_lea.hbm %s3901_s22, 2048 }
  0x85   :  { %p3019_p6 = scmp.ne.s32.totalorder %s3901_s22, %s3018_s27  ;;  %p3022_p7 = scmp.lt.u32.totalorder %s3018_s27, %s3901_s22 }
  0x87   :  { %p3024_p8 = pnand %p3022_p7, %p3019_p6 }
  0x89   :  { %3027 = shalt.err (!%p3024_p8)
}
  0x8a   :  { %s3028_s19 = scalar_lea.vmem %s219_s7, 2048  ;;  %p3033_p10 = scmp.lt.s32.totalorder %s219_s7, %s219_s7 }
  0x8b   :  { %p3029_p9 = scmp.ne.s32.totalorder %s219_s7, %s3028_s19  ;;  %p3034_p11 = scmp.lt.s32.totalorder %s3028_s19, %s3028_s19 }
  0x8d   :  { %p3035_p12 = por %p3034_p11, %p3033_p10 }
  0x8f   :  { %p3036_p13 = pnand %p3035_p12, %p3029_p9 }
  0x91   :  { %3039 = shalt.err (!%p3036_p13)
}
  0x92   :  { %224 = dma.hbm_to_vmem [thread:$0]  %s3901_s22, 2048, %s219_s7, [#allocation27], %s3258_s5, %s3258_s5, %s3259_s0  }
  0x93   :  { %s3926_s29 = sld [smem:[#allocation40_spill]] }
  0x99   :  { %s3040_s16 = scalar_lea.hbm %s3926_s29, 2048 }
  0x9a   :  { %p3041_p0 = scmp.ne.s32.totalorder %s3926_s29, %s3040_s16  ;;  %p3044_p1 = scmp.lt.u32.totalorder %s3040_s16, %s3926_s29 }
  0x9c   :  { %p3046_p2 = pnand %p3044_p1, %p3041_p0 }
  0x9e   :  { %3049 = shalt.err (!%p3046_p2)
}
  0x9f   :  { %s3050_s3 = scalar_lea.vmem %s3518_s25, 2048  ;;  %p3055_p4 = scmp.lt.s32.totalorder %s3518_s25, %s3518_s25 }
  0xa0   :  { %p3051_p3 = scmp.ne.s32.totalorder %s3518_s25, %s3050_s3  ;;  %p3056_p5 = scmp.lt.s32.totalorder %s3050_s3, %s3050_s3 }
  0xa2   :  { %p3057_p6 = por %p3056_p5, %p3055_p4 }
  0xa4   :  { %p3058_p7 = pnand %p3057_p6, %p3051_p3 }
  0xa6   :  { %3061 = shalt.err (!%p3058_p7)
}
  0xa7   :  { %52 = dma.hbm_to_vmem [thread:$0]  %s3926_s29, 2048, %s3518_s25, [#allocation6], %s3258_s5, %s3258_s5, %s3259_s0  }
  0xa8   :  { %s3266_s27 = smov [#allocation10]   ;;  %s3267_s10 = smov [#allocation13]  }
  0xa9   :  { %s74_s4 = sshll.u32 %s3266_s27, 4  ;;  %s102_s6 = sshll.u32 %s3267_s10, 4  ;;  %s75_s4 = int_to_ptr.vmem [resolvable:$true] %s74_s4  ;;  %s3555_s6 = int_to_ptr.vmem [resolvable:$true] %s102_s6 }
  0xaa   :  { %s3927_s1 = sld [smem:[#allocation44_spill]] }
  0xb0   :  { %s3062_s30 = scalar_lea.hbm %s3927_s1, 2048 }
  0xb1   :  { %p3063_p8 = scmp.ne.s32.totalorder %s3927_s1, %s3062_s30  ;;  %p3066_p9 = scmp.lt.u32.totalorder %s3062_s30, %s3927_s1 }
  0xb3   :  { %p3068_p10 = pnand %p3066_p9, %p3063_p8 }
  0xb5   :  { %3071 = shalt.err (!%p3068_p10)
}
  0xb6   :  { %s3072_s25 = scalar_lea.vmem %s75_s4, 2048  ;;  %p3077_p12 = scmp.lt.s32.totalorder %s75_s4, %s75_s4 }
  0xb7   :  { %p3073_p11 = scmp.ne.s32.totalorder %s75_s4, %s3072_s25  ;;  %p3078_p13 = scmp.lt.s32.totalorder %s3072_s25, %s3072_s25 }
  0xb9   :  { %p3079_p0 = por %p3078_p13, %p3077_p12 }
  0xbb   :  { %p3080_p1 = pnand %p3079_p0, %p3073_p11 }
  0xbd   :  { %3083 = shalt.err (!%p3080_p1)
}
  0xbe   :  { %80 = dma.hbm_to_vmem [thread:$0]  %s3927_s1, 2048, %s75_s4, [#allocation9], %s3258_s5, %s3258_s5, %s3259_s0  }
  0xbf   :  { %s3928_s3 = sld [smem:[#allocation48_spill]] }
  0xc5   :  { %s3084_s22 = scalar_lea.hbm %s3928_s3, 2048 }
  0xc6   :  { %p3085_p2 = scmp.ne.s32.totalorder %s3928_s3, %s3084_s22  ;;  %p3088_p3 = scmp.lt.u32.totalorder %s3084_s22, %s3928_s3 }
  0xc8   :  { %p3090_p4 = pnand %p3088_p3, %p3085_p2 }
  0xca   :  { %3093 = shalt.err (!%p3090_p4)
}
  0xcb   :  { %s3094_s19 = scalar_lea.vmem %s3555_s6, 2048  ;;  %p3099_p6 = scmp.lt.s32.totalorder %s3555_s6, %s3555_s6 }
  0xcc   :  { %p3095_p5 = scmp.ne.s32.totalorder %s3555_s6, %s3094_s19  ;;  %p3100_p7 = scmp.lt.s32.totalorder %s3094_s19, %s3094_s19 }
  0xce   :  { %p3101_p8 = por %p3100_p7, %p3099_p6 }
  0xd0   :  { %p3102_p9 = pnand %p3101_p8, %p3095_p5 }
  0xd2   :  { %3105 = shalt.err (!%p3102_p9)
}
  0xd3   :  { %108 = dma.hbm_to_vmem [thread:$0]  %s3928_s3, 2048, %s3555_s6, [#allocation12], %s3258_s5, %s3258_s5, %s3259_s0  }
  0xd4   :  { %s3268_s30 = smov [#allocation16]   ;;  %s3269_s26 = smov [#allocation19]  }
  0xd5   :  { %s128_s2 = sshll.u32 %s3268_s30, 4  ;;  %s154_s16 = sshll.u32 %s3269_s26, 4  ;;  %s129_s2 = int_to_ptr.vmem [resolvable:$true] %s128_s2  ;;  %s3592_s16 = int_to_ptr.vmem [resolvable:$true] %s154_s16 }
  0xd6   :  { %s3106_s29 = scalar_lea.hbm %s3891_s12, 2048 }
  0xd7   :  { %p3107_p10 = scmp.ne.s32.totalorder %s3891_s12, %s3106_s29  ;;  %p3110_p11 = scmp.lt.u32.totalorder %s3106_s29, %s3891_s12 }
  0xd9   :  { %p3112_p12 = pnand %p3110_p11, %p3107_p10 }
  0xdb   :  { %3115 = shalt.err (!%p3112_p12)
}
  0xdc   :  { %s3116_s6 = scalar_lea.vmem %s129_s2, 2048  ;;  %p3121_p0 = scmp.lt.s32.totalorder %s129_s2, %s129_s2 }
  0xdd   :  { %p3117_p13 = scmp.ne.s32.totalorder %s129_s2, %s3116_s6  ;;  %p3122_p1 = scmp.lt.s32.totalorder %s3116_s6, %s3116_s6 }
  0xdf   :  { %p3123_p2 = por %p3122_p1, %p3121_p0 }
  0xe1   :  { %p3124_p3 = pnand %p3123_p2, %p3117_p13 }
  0xe3   :  { %3127 = shalt.err (!%p3124_p3)
}
  0xe4   :  { %134 = dma.hbm_to_vmem [thread:$0]  %s3891_s12, 2048, %s129_s2, [#allocation15], %s3258_s5, %s3258_s5, %s3259_s0  }
  0xe5   :  { %s3128_s28 = scalar_lea.hbm %s3894_s15, 2048 }
  0xe6   :  { %p3129_p4 = scmp.ne.s32.totalorder %s3894_s15, %s3128_s28  ;;  %p3132_p5 = scmp.lt.u32.totalorder %s3128_s28, %s3894_s15 }
  0xe8   :  { %p3134_p6 = pnand %p3132_p5, %p3129_p4 }
  0xea   :  { %3137 = shalt.err (!%p3134_p6)
}
  0xeb   :  { %s3138_s26 = scalar_lea.vmem %s3592_s16, 2048  ;;  %p3143_p8 = scmp.lt.s32.totalorder %s3592_s16, %s3592_s16 }
  0xec   :  { %p3139_p7 = scmp.ne.s32.totalorder %s3592_s16, %s3138_s26  ;;  %p3144_p9 = scmp.lt.s32.totalorder %s3138_s26, %s3138_s26 }
  0xee   :  { %p3145_p10 = por %p3144_p9, %p3143_p8 }
  0xf0   :  { %p3146_p11 = pnand %p3145_p10, %p3139_p7 }
  0xf2   :  { %3149 = shalt.err (!%p3146_p11)
}
  0xf3   :  { %160 = dma.hbm_to_vmem [thread:$0]  %s3894_s15, 2048, %s3592_s16, [#allocation18], %s3258_s5, %s3258_s5, %s3259_s0  }
  0xf4   :  { %s3270_s9 = smov [#allocation22]   ;;  %s3271_s29 = smov [#allocation25]  }
  0xf5   :  { %s180_s25 = sshll.u32 %s3270_s9, 4  ;;  %s206_s23 = sshll.u32 %s3271_s29, 4  ;;  %s181_s25 = int_to_ptr.vmem [resolvable:$true] %s180_s25  ;;  %s3629_s23 = int_to_ptr.vmem [resolvable:$true] %s206_s23 }
  0xf6   :  { %s3150_s22 = scalar_lea.hbm %s3897_s18, 4096 }
  0xf7   :  { %p3151_p12 = scmp.ne.s32.totalorder %s3897_s18, %s3150_s22  ;;  %p3154_p13 = scmp.lt.u32.totalorder %s3150_s22, %s3897_s18 }
  0xf9   :  { %p3156_p0 = pnand %p3154_p13, %p3151_p12 }
  0xfb   :  { %3159 = shalt.err (!%p3156_p0)
}
  0xfc   :  { %s3160_s15 = scalar_lea.vmem %s181_s25, 4096  ;;  %p3165_p2 = scmp.lt.s32.totalorder %s181_s25, %s181_s25 }
  0xfd   :  { %p3161_p1 = scmp.ne.s32.totalorder %s181_s25, %s3160_s15  ;;  %p3166_p3 = scmp.lt.s32.totalorder %s3160_s15, %s3160_s15 }
  0xff   :  { %p3167_p4 = por %p3166_p3, %p3165_p2 }
 0x101   :  { %p3168_p5 = pnand %p3167_p4, %p3161_p1 }
 0x103   :  { %3171 = shalt.err (!%p3168_p5)
}
 0x104   :  { %186 = dma.hbm_to_vmem [thread:$0]  %s3897_s18, 4096, %s181_s25, [#allocation21], %s3258_s5, %s3258_s5, %s3259_s0  }
 0x105   :  { %s3172_s4 = scalar_lea.hbm %s3900_s21, 4096 }
 0x106   :  { %p3173_p6 = scmp.ne.s32.totalorder %s3900_s21, %s3172_s4  ;;  %p3176_p7 = scmp.lt.u32.totalorder %s3172_s4, %s3900_s21 }
 0x108   :  { %p3178_p8 = pnand %p3176_p7, %p3173_p6 }
 0x10a   :  { %3181 = shalt.err (!%p3178_p8)
}
 0x10b   :  { %s3182_s2 = scalar_lea.vmem %s3629_s23, 4096  ;;  %p3187_p10 = scmp.lt.s32.totalorder %s3629_s23, %s3629_s23 }
 0x10c   :  { %p3183_p9 = scmp.ne.s32.totalorder %s3629_s23, %s3182_s2  ;;  %p3188_p11 = scmp.lt.s32.totalorder %s3182_s2, %s3182_s2 }
 0x10e   :  { %p3189_p12 = por %p3188_p11, %p3187_p10 }
 0x110   :  { %p3190_p13 = pnand %p3189_p12, %p3183_p9 }
 0x112   :  { %3193 = shalt.err (!%p3190_p13)
}
 0x113   :  { %212 = dma.hbm_to_vmem [thread:$0]  %s3900_s21, 4096, %s3629_s23, [#allocation24], %s3258_s5, %s3258_s5, %s3259_s0  }
 0x114   :  { %s3272_s25 = smov [#allocation28]   ;;  %s3194_s22 = scalar_lea.hbm %s3903_s24, 4096 }
 0x115   :  { %s232_s29 = sshll.u32 %s3272_s25, 4  ;;  %p3195_p0 = scmp.ne.s32.totalorder %s3903_s24, %s3194_s22  ;;  %s233_s29 = int_to_ptr.vmem [resolvable:$true] %s232_s29 }
 0x116   :  { %p3198_p1 = scmp.lt.u32.totalorder %s3194_s22, %s3903_s24 }
 0x118   :  { %p3200_p2 = pnand %p3198_p1, %p3195_p0 }
 0x11a   :  { %3203 = shalt.err (!%p3200_p2)
}
 0x11b   :  { %s3204_s15 = scalar_lea.vmem %s233_s29, 4096  ;;  %p3209_p4 = scmp.lt.s32.totalorder %s233_s29, %s233_s29 }
 0x11c   :  { %p3205_p3 = scmp.ne.s32.totalorder %s233_s29, %s3204_s15  ;;  %p3210_p5 = scmp.lt.s32.totalorder %s3204_s15, %s3204_s15 }
 0x11e   :  { %p3211_p6 = por %p3210_p5, %p3209_p4 }
 0x120   :  { %p3212_p7 = pnand %p3211_p6, %p3205_p3 }
 0x122   :  { %3215 = shalt.err (!%p3212_p7)
}
 0x123   :  { %238 = dma.hbm_to_vmem [thread:$0]  %s3903_s24, 4096, %s233_s29, [#allocation27], %s3258_s5, %s3258_s5, %s3259_s0  }
 0x124   :  { %3238 = dma.done.wait [#allocation6], 2048  }
 0x125   :  { %3239 = vsyncadd [#allocation6], 4294965248 }
 0x126   :  { %3240 = dma.done.wait [#allocation9], 4096  }
 0x127   :  { %3241 = vsyncadd [#allocation9], 4294963200 }
 0x128   :  { %3242 = dma.done.wait [#allocation12], 4096  }
 0x129   :  { %3243 = vsyncadd [#allocation12], 4294963200 }
 0x12a   :  { %3244 = dma.done.wait [#allocation15], 4096  }
 0x12b   :  { %3245 = vsyncadd [#allocation15], 4294963200 }
 0x12c   :  { %3246 = dma.done.wait [#allocation18], 4096  }
 0x12d   :  { %3247 = vsyncadd [#allocation18], 4294963200 }
 0x12e   :  { %3248 = dma.done.wait [#allocation21], 6144  }
 0x12f   :  { %3249 = vsyncadd [#allocation21], 4294961152 }
 0x130   :  { %3250 = dma.done.wait [#allocation24], 6144  }
 0x131   :  { %3251 = vsyncadd [#allocation24], 4294961152 }
 0x132   :  { %3252 = dma.done.wait [#allocation27], 6144  }
 0x133   :  { %3253 = vsyncadd [#allocation27], 4294961152  ;;  %v3273_v0 = vmov 0.0|0.0   ;;  %vm3274_vm0 = vmmov 0   ;;  %v3275_v1 = vmov 0.0   ;;  %v285_v2 = vld [vmem:[#allocation5] sm:$0xff] }
 0x134   :  { %2480 = vmatprep.subr.bf16.mxu0 %v3273_v0  ;;  %2092 = vmatprep.mubr.msk.f32.mxu0 %vm3274_vm0, %v3275_v1  ;;  %v286_v3 = vld [vmem:[#allocation5 + $0x8] sm:$0xff]  ;;  %v287_v4 = vld [vmem:[#allocation5 + $0x10] sm:$0xff]  ;;  %v288_v6 = vld [vmem:[#allocation5 + $0x18] sm:$0xff]  ;;  %s3929_s0 = sld [smem:[#allocation39_spill]]  ;;  %s3930_s28 = sld [smem:[#allocation41_spill]] }
 0x135   :  { %2504 = vmatprep.subr.bf16.mxu1 %v3273_v0  ;;  %2127 = vmatprep.mubr.msk.f32.mxu1 %vm3274_vm0, %v3275_v1  ;;  %v2481_v5 = vpack.c.bf16 %v286_v3, %v285_v2  ;;  %v2484_v7 = vpack.c.bf16 %v288_v6, %v287_v4  ;;  %v289_v8 = vld [vmem:[#allocation5 + $0x20] sm:$0xff]  ;;  %v290_v9 = vld [vmem:[#allocation5 + $0x28] sm:$0xff]  ;;  %v382_v12 = vld [vmem:[#allocation8 + $0x10] sm:$0xff]  ;;  %s3931_s1 = sld [smem:[#allocation43_spill]]  ;;  %s3932_s12 = sld [smem:[#allocation45_spill]] }
 0x136   :  { %v380_v10 = vld [vmem:[#allocation8] sm:$0xff]  ;;  %v381_v11 = vld [vmem:[#allocation8 + $0x8] sm:$0xff]  ;;  %v383_v13 = vld [vmem:[#allocation8 + $0x18] sm:$0xff]  ;;  %v2487_v14 = vpack.c.bf16 %v290_v9, %v289_v8  ;;  %s3933_s9 = sld [smem:[#allocation47_spill]]  ;;  %s3934_s15 = sld [smem:[#allocation49_spill]] }
 0x137   :  { %2482 = vmatpush3.bf16.msra.mxu0 %v2481_v5  ;;  %v2505_v15 = vpack.c.bf16 %v381_v11, %v380_v10  ;;  %v291_v16 = vld [vmem:[#allocation5 + $0x30] sm:$0xff]  ;;  %v292_v17 = vld [vmem:[#allocation5 + $0x38] sm:$0xff]  ;;  %v2508_v18 = vpack.c.bf16 %v383_v13, %v382_v12  ;;  %v384_v19 = vld [vmem:[#allocation8 + $0x20] sm:$0xff]  ;;  %s3276_s21 = smov [#allocation29]  }
 0x138   :  { %2483 = vmatprep.subr.bf16.mxu0 %v3273_v0  ;;  %v385_v20 = vld [vmem:[#allocation8 + $0x28] sm:$0xff]  ;;  %v2490_v21 = vpack.c.bf16 %v292_v17, %v291_v16  ;;  %v293_v22 = vld [vmem:[#allocation5 + $0x40] sm:$0xff]  ;;  %v386_v25 = vld [vmem:[#allocation8 + $0x30] sm:$0xff]  ;;  %s1726_s23 = sshll.u32 %s3276_s21, 4  ;;  %s1727_s23 = int_to_ptr.vmem [resolvable:$true] %s1726_s23 }
 0x139   :  { %2506 = vmatpush3.bf16.msra.mxu1 %v2505_v15  ;;  %v294_v23 = vld [vmem:[#allocation5 + $0x48] sm:$0xff]  ;;  %v2511_v24 = vpack.c.bf16 %v385_v20, %v384_v19  ;;  %v387_v26 = vld [vmem:[#allocation8 + $0x38] sm:$0xff]  ;;  %v295_v28 = vld [vmem:[#allocation5 + $0x50] sm:$0xff]  ;;  %s3216_s24 = scalar_lea.vmem %s1727_s23, 128  ;;  %p3221_p9 = scmp.lt.s32.totalorder %s1727_s23, %s1727_s23 }
 0x13a   :  { %2507 = vmatprep.subr.bf16.mxu1 %v3273_v0  ;;  %v2493_v27 = vpack.c.bf16 %v294_v23, %v293_v22  ;;  %v296_v29 = vld [vmem:[#allocation5 + $0x58] sm:$0xff]  ;;  %v2514_v30 = vpack.c.bf16 %v387_v26, %v386_v25  ;;  %v388_v31 = vld [vmem:[#allocation8 + $0x40] sm:$0xff]  ;;  %v389_v32 = vld [vmem:[#allocation8 + $0x48] sm:$0xff]  ;;  %p3217_p8 = scmp.ne.s32.totalorder %s1727_s23, %s3216_s24  ;;  %p3222_p10 = scmp.lt.s32.totalorder %s3216_s24, %s3216_s24 }
 0x13b   :  { %2485 = vmatpush3.bf16.msra.mxu0 %v2484_v7  ;;  %v2496_v33 = vpack.c.bf16 %v296_v29, %v295_v28  ;;  %v297_v34 = vld [vmem:[#allocation5 + $0x60] sm:$0xff]  ;;  %v298_v35 = vld [vmem:[#allocation5 + $0x68] sm:$0xff]  ;;  %v2517_v36 = vpack.c.bf16 %v389_v32, %v388_v31  ;;  %v390_v37 = vld [vmem:[#allocation8 + $0x50] sm:$0xff] }
 0x13c   :  { %2486 = vmatprep.subr.bf16.mxu0 %v3273_v0  ;;  %v391_v38 = vld [vmem:[#allocation8 + $0x58] sm:$0xff]  ;;  %v2499_v39 = vpack.c.bf16 %v298_v35, %v297_v34  ;;  %v299_v40 = vld [vmem:[#allocation5 + $0x70] sm:$0xff]  ;;  %v392_v43 = vld [vmem:[#allocation8 + $0x60] sm:$0xff]  ;;  %p3223_p11 = por %p3222_p10, %p3221_p9 }
 0x13d   :  { %2509 = vmatpush3.bf16.msra.mxu1 %v2508_v18  ;;  %v300_v41 = vld [vmem:[#allocation5 + $0x78] sm:$0xff]  ;;  %v2520_v42 = vpack.c.bf16 %v391_v38, %v390_v37  ;;  %v393_v44 = vld [vmem:[#allocation8 + $0x68] sm:$0xff]  ;;  %v3703_v47 = vld [vmem:[%s3929_s0] sm:$0xff] }
 0x13e   :  { %2510 = vmatprep.subr.bf16.mxu1 %v3273_v0  ;;  %v2502_v45 = vpack.c.bf16 %v300_v41, %v299_v40  ;;  %v2523_v46 = vpack.c.bf16 %v393_v44, %v392_v43  ;;  %v394_v48 = vld [vmem:[#allocation8 + $0x70] sm:$0xff]  ;;  %v395_v49 = vld [vmem:[#allocation8 + $0x78] sm:$0xff]  ;;  %v475_v51 = vld [vmem:[#allocation10] sm:$0xff]  ;;  %p3224_p12 = pnand %p3223_p11, %p3217_p8 }
 0x13f   :  { %2488 = vmatpush3.bf16.msra.mxu0 %v2487_v14  ;;  %v2526_v50 = vpack.c.bf16 %v395_v49, %v394_v48  ;;  %v476_v52 = vld [vmem:[#allocation10 + $0x8] sm:$0xff]  ;;  %v477_v54 = vld [vmem:[#allocation10 + $0x10] sm:$0xff]  ;;  %v478_v55 = vld [vmem:[#allocation10 + $0x18] sm:$0xff] }
 0x140   :  { %2489 = vmatprep.subr.bf16.mxu0 %v3273_v0  ;;  %v2529_v53 = vpack.c.bf16 %v476_v52, %v475_v51  ;;  %v2532_v56 = vpack.c.bf16 %v478_v55, %v477_v54  ;;  %v479_v57 = vld [vmem:[#allocation10 + $0x20] sm:$0xff]  ;;  %v480_v58 = vld [vmem:[#allocation10 + $0x28] sm:$0xff]  ;;  %v481_v60 = vld [vmem:[#allocation10 + $0x30] sm:$0xff] }
 0x141   :  { %2512 = vmatpush3.bf16.msra.mxu1 %v2511_v24  ;;  %v2535_v59 = vpack.c.bf16 %v480_v58, %v479_v57  ;;  %v482_v61 = vld [vmem:[#allocation10 + $0x38] sm:$0xff]  ;;  %v483_v63 = vld [vmem:[#allocation10 + $0x40] sm:$0xff]  ;;  %v484_v2 = vld [vmem:[#allocation10 + $0x48] sm:$0xff] }
 0x142   :  { %2513 = vmatprep.subr.bf16.mxu1 %v3273_v0  ;;  %v2538_v62 = vpack.c.bf16 %v482_v61, %v481_v60  ;;  %v2541_v3 = vpack.c.bf16 %v484_v2, %v483_v63  ;;  %v485_v4 = vld [vmem:[#allocation10 + $0x50] sm:$0xff]  ;;  %v486_v5 = vld [vmem:[#allocation10 + $0x58] sm:$0xff]  ;;  %v487_v7 = vld [vmem:[#allocation10 + $0x60] sm:$0xff] }
 0x143   :  { %2491 = vmatpush3.bf16.msra.mxu0 %v2490_v21  ;;  %v2544_v6 = vpack.c.bf16 %v486_v5, %v485_v4  ;;  %v488_v8 = vld [vmem:[#allocation10 + $0x68] sm:$0xff]  ;;  %v1742_v10 = vld [vmem:[%s3930_s28] ss:$0 sm:$0xff]  ;;  %v589_v18 = vld [vmem:[#allocation13 + $0x10] sm:$0xff] }
 0x144   :  { %2492 = vmatprep.subr.bf16.mxu0 %v3273_v0  ;;  %v2547_v9 = vpack.c.bf16 %v488_v8, %v487_v7  ;;  %v587_v11 = vld [vmem:[#allocation13] sm:$0xff]  ;;  %v588_v12 = vld [vmem:[#allocation13 + $0x8] sm:$0xff]  ;;  %v590_v19 = vld [vmem:[#allocation13 + $0x18] sm:$0xff] }
 0x145   :  { %2515 = vmatpush3.bf16.msra.mxu1 %v2514_v30  ;;  %v2553_v16 = vpack.c.bf16 %v588_v12, %v587_v11  ;;  %v2556_v20 = vpack.c.bf16 %v590_v19, %v589_v18  ;;  %v591_v21 = vld [vmem:[#allocation13 + $0x20] sm:$0xff]  ;;  %v592_v22 = vld [vmem:[#allocation13 + $0x28] sm:$0xff]  ;;  %v593_v24 = vld [vmem:[#allocation13 + $0x30] sm:$0xff] }
 0x146   :  { %2516 = vmatprep.subr.bf16.mxu1 %v3273_v0  ;;  %v2559_v23 = vpack.c.bf16 %v592_v22, %v591_v21  ;;  %v594_v25 = vld [vmem:[#allocation13 + $0x38] sm:$0xff]  ;;  %v596_v28 = vld [vmem:[#allocation13 + $0x48] sm:$0xff]  ;;  %v597_v30 = vld [vmem:[#allocation13 + $0x50] sm:$0xff] }
 0x147   :  { %2494 = vmatpush3.bf16.msra.mxu0 %v2493_v27  ;;  %v2562_v26 = vpack.c.bf16 %v594_v25, %v593_v24  ;;  %v595_v27 = vld [vmem:[#allocation13 + $0x40] sm:$0xff]  ;;  %v598_v31 = vld [vmem:[#allocation13 + $0x58] sm:$0xff]  ;;  %v600_v34 = vld [vmem:[#allocation13 + $0x68] sm:$0xff] }
 0x148   :  { %2495 = vmatprep.subr.bf16.mxu0 %v3273_v0  ;;  %v2565_v29 = vpack.c.bf16 %v596_v28, %v595_v27  ;;  %v2568_v32 = vpack.c.bf16 %v598_v31, %v597_v30  ;;  %v602_v37 = vld [vmem:[#allocation13 + $0x78] sm:$0xff]  ;;  %v771_v40 = vld [vmem:[#allocation16 + $0x8] sm:$0xff]  ;;  %v776_v49 = vld [vmem:[#allocation16 + $0x30] sm:$0xff] }
 0x149   :  { %2518 = vmatpush3.bf16.msra.mxu1 %v2517_v36  ;;  %v601_v36 = vld [vmem:[#allocation13 + $0x70] sm:$0xff]  ;;  %v773_v43 = vld [vmem:[#allocation16 + $0x18] sm:$0xff]  ;;  %v778_v52 = vld [vmem:[#allocation16 + $0x40] sm:$0xff] }
 0x14a   :  { %2519 = vmatprep.subr.bf16.mxu1 %v3273_v0  ;;  %v2574_v38 = vpack.c.bf16 %v602_v37, %v601_v36  ;;  %v780_v55 = vld [vmem:[#allocation16 + $0x50] sm:$0xff]  ;;  %v782_v58 = vld [vmem:[#allocation16 + $0x60] sm:$0xff]  ;;  %v571_v7 = vld [vmem:[#allocation11 + $0x8] sm:$0xff] }
 0x14b   :  { %2497 = vmatpush3.bf16.msra.mxu0 %v2496_v33  ;;  %v599_v33 = vld [vmem:[#allocation13 + $0x60] sm:$0xff]  ;;  %v489_v61 = vld [vmem:[#allocation10 + $0x70] sm:$0xff] }
 0x14c   :  { %2498 = vmatprep.subr.bf16.mxu0 %v3273_v0  ;;  %v2571_v35 = vpack.c.bf16 %v600_v34, %v599_v33  ;;  %v784_v2 = vld [vmem:[#allocation16 + $0x70] sm:$0xff]  ;;  %v1743_v5 = vld [vmem:[%s3931_s1] ss:$0 sm:$0xff] }
 0x14d   :  { %2521 = vmatpush3.bf16.msra.mxu1 %v2520_v42  ;;  %v772_v42 = vld [vmem:[#allocation16 + $0x10] sm:$0xff]  ;;  %v574_v22 = vld [vmem:[#allocation11 + $0x20] sm:$0xff] }
 0x14e   :  { %2522 = vmatprep.subr.bf16.mxu1 %v3273_v0  ;;  %v2604_v44 = vpack.c.bf16 %v773_v43, %v772_v42  ;;  %v955_v19 = vld [vmem:[#allocation19 + $0x10] sm:$0xff]  ;;  %v957_v25 = vld [vmem:[#allocation19 + $0x20] sm:$0xff] }
 0x14f   :  { %2500 = vmatpush3.bf16.msra.mxu0 %v2499_v39  ;;  %v770_v39 = vld [vmem:[#allocation16] sm:$0xff]  ;;  %v576_v28 = vld [vmem:[#allocation11 + $0x30] sm:$0xff] }
 0x150   :  { %2501 = vmatprep.subr.bf16.mxu0 %v3273_v0  ;;  %v2601_v41 = vpack.c.bf16 %v771_v40, %v770_v39  ;;  %v959_v31 = vld [vmem:[#allocation19 + $0x30] sm:$0xff]  ;;  %v578_v34 = vld [vmem:[#allocation11 + $0x40] sm:$0xff] }
 0x151   :  { %2524 = vmatpush3.bf16.msra.mxu1 %v2523_v46  ;;  %v775_v46 = vld [vmem:[#allocation16 + $0x28] sm:$0xff]  ;;  %v961_v37 = vld [vmem:[#allocation19 + $0x40] sm:$0xff]  ;;  %v580_v40 = vld [vmem:[#allocation11 + $0x50] sm:$0xff] }
 0x152   :  { %2525 = vmatprep.subr.bf16.mxu1 %v3273_v0  ;;  %v963_v43 = vld [vmem:[#allocation19 + $0x50] sm:$0xff] }
 0x153   :  { %2503 = vmatpush3.bf16.msra.mxu0 %v2502_v45  ;;  %v774_v45 = vld [vmem:[#allocation16 + $0x20] sm:$0xff] }
 0x154   :  { %2528 = vmatprep.subr.bf16.mxu0 %v3273_v0  ;;  %v2607_v48 = vpack.c.bf16 %v775_v46, %v774_v45  ;;  %v582_v46 = vld [vmem:[#allocation11 + $0x60] sm:$0xff] }
 0x155   :  { %2527 = vmatpush3.bf16.msra.mxu1 %v2526_v50  ;;  %v777_v50 = vld [vmem:[#allocation16 + $0x38] sm:$0xff] }
 0x156   :  { %2093 = vmatmul.mubr.f32.vlgmr.msra.gmra.mrb[0].mxu0 %v3703_v47  ;;  %2552 = vmatprep.subr.bf16.mxu1 %v3273_v0  ;;  %v2610_v51 = vpack.c.bf16 %v777_v50, %v776_v49  ;;  %v965_v50 = vld [vmem:[#allocation19 + $0x60] sm:$0xff] }
 0x157   :  { %2162 = vmatprep.mubr.msk.f32.mxu0 %vm3274_vm0, %v3275_v1  ;;  %2530 = vmatpush3.bf16.msra.mxu0 %v2529_v53  ;;  %v779_v53 = vld [vmem:[#allocation16 + $0x48] sm:$0xff] }
 0x158   :  { %2531 = vmatprep.subr.bf16.mxu0 %v3273_v0  ;;  %v2613_v54 = vpack.c.bf16 %v779_v53, %v778_v52  ;;  %v584_v53 = vld [vmem:[#allocation11 + $0x70] sm:$0xff] }
 0x15b   :  { %2533 = vmatpush3.bf16.msra.mxu0 %v2532_v56  ;;  %v781_v56 = vld [vmem:[#allocation16 + $0x58] sm:$0xff] }
 0x15c   :  { %2534 = vmatprep.subr.bf16.mxu0 %v3273_v0  ;;  %v2616_v57 = vpack.c.bf16 %v781_v56, %v780_v55 }
 0x15f   :  { %2536 = vmatpush3.bf16.msra.mxu0 %v2535_v59  ;;  %v783_v59 = vld [vmem:[#allocation16 + $0x68] sm:$0xff] }
 0x160   :  { %2537 = vmatprep.subr.bf16.mxu0 %v3273_v0  ;;  %v2619_v60 = vpack.c.bf16 %v783_v59, %v782_v58  ;;  %v967_v59 = vld [vmem:[#allocation19 + $0x70] sm:$0xff] }
 0x163   :  { %2539 = vmatpush3.bf16.msra.mxu0 %v2538_v62  ;;  %v490_v62 = vld [vmem:[#allocation10 + $0x78] sm:$0xff] }
 0x164   :  { %2540 = vmatprep.subr.bf16.mxu0 %v3273_v0  ;;  %v2550_v63 = vpack.c.bf16 %v490_v62, %v489_v61  ;;  %v753_v62 = vld [vmem:[#allocation14] sm:$0xff] }
 0x167   :  { %2542 = vmatpush3.bf16.msra.mxu0 %v2541_v3  ;;  %v785_v3 = vld [vmem:[#allocation16 + $0x78] sm:$0xff] }
 0x168   :  { %2543 = vmatprep.subr.bf16.mxu0 %v3273_v0  ;;  %v2622_v4 = vpack.c.bf16 %v785_v3, %v784_v2  ;;  %v1153_v2 = vld [vmem:[#allocation22 + $0x80] sm:$0xff] }
 0x16b   :  { %2545 = vmatpush3.bf16.msra.mxu0 %v2544_v6  ;;  %v570_v6 = vld [vmem:[#allocation11] sm:$0xff] }
 0x16c   :  { %2546 = vmatprep.subr.bf16.mxu0 %v3273_v0 }
 0x16f   :  { %2548 = vmatpush3.bf16.msra.mxu0 %v2547_v9  ;;  %v953_v9 = vld [vmem:[#allocation19] sm:$0xff] }
 0x170   :  { %2549 = vmatprep.subr.bf16.mxu0 %v3273_v0 }
 0x173   :  { %2551 = vmatpush3.bf16.msra.mxu0 %v2550_v63  ;;  %v754_v63 = vld [vmem:[#allocation14 + $0x8] sm:$0xff] }
 0x174   :  { %2576 = vmatprep.subr.bf16.mxu0 %v3273_v0  ;;  %v2625_v3 = vpack.c.bf16 %v754_v63, %v753_v62  ;;  %v1146_v62 = vld [vmem:[#allocation22 + $0x48] sm:$0xff]  ;;  %v1163_v63 = vld [vmem:[#allocation22 + $0xd0] sm:$0xff] }
 0x229   :  { %v374_v13 = vpop.f32.mrb[0].mxu0 }
 0x22a   :  { %v375_v14 = vadd.f32 %v1742_v10, %v374_v13  ;;  %v2094_v15 = vpop.f32.mrb[1].mxu0  ;;  %v954_v10 = vld [vmem:[#allocation19 + $0x8] sm:$0xff]  ;;  %v2577_v13 = vpack.c.bf16 %v571_v7, %v570_v6  ;;  %v755_v6 = vld [vmem:[#allocation14 + $0x10] sm:$0xff]  ;;  %v756_v7 = vld [vmem:[#allocation14 + $0x18] sm:$0xff] }
 0x22b   :  { %v572_v15 = vld [vmem:[#allocation11 + $0x10] sm:$0xff]  ;;  %v2649_v18 = vpack.c.bf16 %v954_v10, %v953_v9  ;;  %v758_v9 = vld [vmem:[#allocation14 + $0x28] sm:$0xff] }
 0x22c   :  { %v3721_v17 = vmax.f32 %v375_v14, 0.0 }
 0x22e   :  { %2128 = vmatmul.mubr.f32.vlgmr.msra.gmra.mrb[0].mxu1 %v3721_v17 }
 0x22f   :  { %2554 = vmatpush3.bf16.msra.mxu1 %v2553_v16  ;;  %2197 = vmatprep.mubr.msk.f32.mxu1 %vm3274_vm0, %v3275_v1  ;;  %v573_v16 = vld [vmem:[#allocation11 + $0x18] sm:$0xff] }
 0x230   :  { %2555 = vmatprep.subr.bf16.mxu1 %v3273_v0  ;;  %v2580_v21 = vpack.c.bf16 %v573_v16, %v572_v15  ;;  %v761_v15 = vld [vmem:[#allocation14 + $0x40] sm:$0xff]  ;;  %v762_v16 = vld [vmem:[#allocation14 + $0x48] sm:$0xff] }
 0x233   :  { %2557 = vmatpush3.bf16.msra.mxu1 %v2556_v20  ;;  %v956_v20 = vld [vmem:[#allocation19 + $0x18] sm:$0xff] }
 0x234   :  { %2558 = vmatprep.subr.bf16.mxu1 %v3273_v0  ;;  %v2652_v24 = vpack.c.bf16 %v956_v20, %v955_v19  ;;  %v763_v19 = vld [vmem:[#allocation14 + $0x50] sm:$0xff]  ;;  %v764_v20 = vld [vmem:[#allocation14 + $0x58] sm:$0xff] }
 0x237   :  { %2560 = vmatpush3.bf16.msra.mxu1 %v2559_v23  ;;  %v575_v23 = vld [vmem:[#allocation11 + $0x28] sm:$0xff] }
 0x238   :  { %2561 = vmatprep.subr.bf16.mxu1 %v3273_v0  ;;  %v2583_v27 = vpack.c.bf16 %v575_v23, %v574_v22  ;;  %v765_v22 = vld [vmem:[#allocation14 + $0x60] sm:$0xff]  ;;  %v766_v23 = vld [vmem:[#allocation14 + $0x68] sm:$0xff] }
 0x23b   :  { %2563 = vmatpush3.bf16.msra.mxu1 %v2562_v26  ;;  %v958_v26 = vld [vmem:[#allocation19 + $0x28] sm:$0xff] }
 0x23c   :  { %2564 = vmatprep.subr.bf16.mxu1 %v3273_v0  ;;  %v2655_v30 = vpack.c.bf16 %v958_v26, %v957_v25  ;;  %v767_v25 = vld [vmem:[#allocation14 + $0x70] sm:$0xff]  ;;  %v768_v26 = vld [vmem:[#allocation14 + $0x78] sm:$0xff] }
 0x23f   :  { %2566 = vmatpush3.bf16.msra.mxu1 %v2565_v29  ;;  %v577_v29 = vld [vmem:[#allocation11 + $0x38] sm:$0xff] }
 0x240   :  { %2567 = vmatprep.subr.bf16.mxu1 %v3273_v0  ;;  %v2586_v33 = vpack.c.bf16 %v577_v29, %v576_v28  ;;  %v1744_v28 = vld [vmem:[%s3932_s12] ss:$0 sm:$0xff] }
 0x241   :  { %v1137_v29 = vld [vmem:[#allocation22] sm:$0xff] }
 0x243   :  { %2569 = vmatpush3.bf16.msra.mxu1 %v2568_v32  ;;  %v960_v32 = vld [vmem:[#allocation19 + $0x38] sm:$0xff] }
 0x244   :  { %2570 = vmatprep.subr.bf16.mxu1 %v3273_v0  ;;  %v2658_v36 = vpack.c.bf16 %v960_v32, %v959_v31 }
 0x247   :  { %2572 = vmatpush3.bf16.msra.mxu1 %v2571_v35  ;;  %v579_v35 = vld [vmem:[#allocation11 + $0x48] sm:$0xff] }
 0x248   :  { %2573 = vmatprep.subr.bf16.mxu1 %v3273_v0  ;;  %v2589_v39 = vpack.c.bf16 %v579_v35, %v578_v34  ;;  %v1156_v34 = vld [vmem:[#allocation22 + $0x98] sm:$0xff] }
 0x24b   :  { %2575 = vmatpush3.bf16.msra.mxu1 %v2574_v38  ;;  %v962_v38 = vld [vmem:[#allocation19 + $0x48] sm:$0xff] }
 0x24c   :  { %2600 = vmatprep.subr.bf16.mxu1 %v3273_v0  ;;  %v2661_v42 = vpack.c.bf16 %v962_v38, %v961_v37 }
 0x24e   :  { %2198 = vmatmul.mubr.f32.vlgmr.msra.gmra.mrb[2].mxu1 %v3721_v17 }
 0x24f   :  { %2602 = vmatpush3.bf16.msra.mxu1 %v2601_v41  ;;  %2267 = vmatprep.mubr.msk.f32.mxu1 %vm3274_vm0, %v3275_v1  ;;  %v581_v41 = vld [vmem:[#allocation11 + $0x58] sm:$0xff] }
 0x250   :  { %2603 = vmatprep.subr.bf16.mxu1 %v3273_v0  ;;  %v2592_v45 = vpack.c.bf16 %v581_v41, %v580_v40  ;;  %v1139_v41 = vld [vmem:[#allocation22 + $0x10] sm:$0xff] }
 0x253   :  { %2605 = vmatpush3.bf16.msra.mxu1 %v2604_v44  ;;  %v964_v44 = vld [vmem:[#allocation19 + $0x58] sm:$0xff] }
 0x254   :  { %2606 = vmatprep.subr.bf16.mxu1 %v3273_v0  ;;  %v2664_v49 = vpack.c.bf16 %v964_v44, %v963_v43  ;;  %v1157_v43 = vld [vmem:[#allocation22 + $0xa0] sm:$0xff]  ;;  %v1158_v44 = vld [vmem:[#allocation22 + $0xa8] sm:$0xff] }
 0x257   :  { %2608 = vmatpush3.bf16.msra.mxu1 %v2607_v48  ;;  %v583_v48 = vld [vmem:[#allocation11 + $0x68] sm:$0xff] }
 0x258   :  { %2609 = vmatprep.subr.bf16.mxu1 %v3273_v0  ;;  %v2595_v52 = vpack.c.bf16 %v583_v48, %v582_v46  ;;  %v2704_v46 = vpack.c.bf16 %v1158_v44, %v1157_v43  ;;  %v1141_v48 = vld [vmem:[#allocation22 + $0x20] sm:$0xff]  ;;  %v1339_v43 = vld [vmem:[#allocation25 + $0x10] sm:$0xff] }
 0x25b   :  { %2611 = vmatpush3.bf16.msra.mxu1 %v2610_v51  ;;  %v966_v51 = vld [vmem:[#allocation19 + $0x68] sm:$0xff] }
 0x25c   :  { %2612 = vmatprep.subr.bf16.mxu1 %v3273_v0  ;;  %v2667_v55 = vpack.c.bf16 %v966_v51, %v965_v50  ;;  %v1159_v50 = vld [vmem:[#allocation22 + $0xb0] sm:$0xff]  ;;  %v1160_v51 = vld [vmem:[#allocation22 + $0xb8] sm:$0xff] }
 0x25f   :  { %2614 = vmatpush3.bf16.msra.mxu1 %v2613_v54  ;;  %v585_v54 = vld [vmem:[#allocation11 + $0x78] sm:$0xff] }
 0x260   :  { %2615 = vmatprep.subr.bf16.mxu1 %v3273_v0  ;;  %v2598_v56 = vpack.c.bf16 %v585_v54, %v584_v53  ;;  %v2708_v53 = vpack.c.bf16 %v1160_v51, %v1159_v50  ;;  %v1143_v54 = vld [vmem:[#allocation22 + $0x30] sm:$0xff]  ;;  %v1358_v50 = vld [vmem:[#allocation25 + $0xa8] sm:$0xff] }
 0x263   :  { %2617 = vmatpush3.bf16.msra.mxu1 %v2616_v57 }
 0x264   :  { %2618 = vmatprep.subr.bf16.mxu1 %v3273_v0 }
 0x267   :  { %2620 = vmatpush3.bf16.msra.mxu1 %v2619_v60  ;;  %v968_v60 = vld [vmem:[#allocation19 + $0x78] sm:$0xff] }
 0x268   :  { %2621 = vmatprep.subr.bf16.mxu1 %v3273_v0  ;;  %v2670_v61 = vpack.c.bf16 %v968_v60, %v967_v59 }
 0x26b   :  { %2623 = vmatpush3.bf16.msra.mxu1 %v2622_v4  ;;  %v1154_v4 = vld [vmem:[#allocation22 + $0x88] sm:$0xff] }
 0x26c   :  { %2648 = vmatprep.subr.bf16.mxu1 %v3273_v0 }
 0x301   :  { %v469_v8 = vpop.f32.mrb[0].mxu1 }
 0x302   :  { %v470_v11 = vadd.f32 %v1743_v5, %v469_v8  ;;  %v2129_v12 = vpop.f32.mrb[1].mxu1  ;;  %v2696_v5 = vpack.c.bf16 %v1154_v4, %v1153_v2  ;;  %v2628_v8 = vpack.c.bf16 %v756_v7, %v755_v6  ;;  %v1164_v2 = vld [vmem:[#allocation22 + $0xd8] sm:$0xff]  ;;  %v1165_v7 = vld [vmem:[#allocation22 + $0xe0] sm:$0xff] }
 0x303   :  { %v760_v12 = vld [vmem:[#allocation14 + $0x38] sm:$0xff]  ;;  %v2716_v4 = vpack.c.bf16 %v1164_v2, %v1163_v63 }
 0x304   :  { %v3749_v14 = vmax.f32 %v470_v11, 0.0  ;;  %v759_v11 = vld [vmem:[#allocation14 + $0x30] sm:$0xff]  ;;  %v1148_v6 = vld [vmem:[#allocation22 + $0x58] sm:$0xff] }
 0x305   :  { %v1344_v63 = vld [vmem:[#allocation25 + $0x38] sm:$0xff] }
 0x306   :  { %2163 = vmatmul.mubr.f32.vlgmr.msra.gmra.mrb[2].mxu0 %v3749_v14  ;;  %2268 = vmatmul.mubr.f32.vlgmr.msra.gmra.mrb[4].mxu1 %v3749_v14 }
 0x307   :  { %2578 = vmatpush3.bf16.msra.mxu0 %v2577_v13  ;;  %2232 = vmatprep.mubr.msk.f32.mxu0 %vm3274_vm0, %v3275_v1  ;;  %v2634_v13 = vpack.c.bf16 %v760_v12, %v759_v11  ;;  %v1150_v11 = vld [vmem:[#allocation22 + $0x68] sm:$0xff]  ;;  %v1167_v12 = vld [vmem:[#allocation22 + $0xf0] sm:$0xff] }
 0x308   :  { %2579 = vmatprep.subr.bf16.mxu0 %v3273_v0  ;;  %2650 = vmatpush3.bf16.msra.mxu1 %v2649_v18  ;;  %v2637_v18 = vpack.c.bf16 %v762_v16, %v761_v15 }
 0x309   :  { %2651 = vmatprep.subr.bf16.mxu1 %v3273_v0  ;;  %2337 = vmatprep.mubr.msk.f32.mxu1 %vm3274_vm0, %v3275_v1 }
 0x30b   :  { %2581 = vmatpush3.bf16.msra.mxu0 %v2580_v21  ;;  %v2640_v21 = vpack.c.bf16 %v764_v20, %v763_v19  ;;  %v1152_v19 = vld [vmem:[#allocation22 + $0x78] sm:$0xff] }
 0x30c   :  { %2582 = vmatprep.subr.bf16.mxu0 %v3273_v0  ;;  %2653 = vmatpush3.bf16.msra.mxu1 %v2652_v24  ;;  %v2643_v24 = vpack.c.bf16 %v766_v23, %v765_v22  ;;  %v1745_v22 = vld [vmem:[%s3933_s9] ss:$0 sm:$0xff] }
 0x30d   :  { %2654 = vmatprep.subr.bf16.mxu1 %v3273_v0 }
 0x30f   :  { %2584 = vmatpush3.bf16.msra.mxu0 %v2583_v27  ;;  %v2646_v27 = vpack.c.bf16 %v768_v26, %v767_v25 }
 0x310   :  { %2585 = vmatprep.subr.bf16.mxu0 %v3273_v0  ;;  %2656 = vmatpush3.bf16.msra.mxu1 %v2655_v30  ;;  %v1138_v30 = vld [vmem:[#allocation22 + $0x8] sm:$0xff] }
 0x311   :  { %2657 = vmatprep.subr.bf16.mxu1 %v3273_v0  ;;  %v2698_v38 = vpack.c.bf16 %v1138_v30, %v1137_v29  ;;  %v1353_v29 = vld [vmem:[#allocation25 + $0x80] sm:$0xff] }
 0x313   :  { %2587 = vmatpush3.bf16.msra.mxu0 %v2586_v33  ;;  %v1155_v33 = vld [vmem:[#allocation22 + $0x90] sm:$0xff] }
 0x314   :  { %2588 = vmatprep.subr.bf16.mxu0 %v3273_v0  ;;  %2659 = vmatpush3.bf16.msra.mxu1 %v2658_v36  ;;  %v2700_v40 = vpack.c.bf16 %v1156_v34, %v1155_v33  ;;  %v1337_v33 = vld [vmem:[#allocation25] sm:$0xff]  ;;  %v1338_v34 = vld [vmem:[#allocation25 + $0x8] sm:$0xff] }
 0x315   :  { %2660 = vmatprep.subr.bf16.mxu1 %v3273_v0 }
 0x317   :  { %2590 = vmatpush3.bf16.msra.mxu0 %v2589_v39 }
 0x318   :  { %2591 = vmatprep.subr.bf16.mxu0 %v3273_v0  ;;  %2662 = vmatpush3.bf16.msra.mxu1 %v2661_v42  ;;  %v1140_v42 = vld [vmem:[#allocation22 + $0x18] sm:$0xff] }
 0x319   :  { %2663 = vmatprep.subr.bf16.mxu1 %v3273_v0 }
 0x31b   :  { %2593 = vmatpush3.bf16.msra.mxu0 %v2592_v45  ;;  %v2702_v45 = vpack.c.bf16 %v1140_v42, %v1139_v41  ;;  %v1356_v42 = vld [vmem:[#allocation25 + $0x98] sm:$0xff] }
 0x31c   :  { %2594 = vmatprep.subr.bf16.mxu0 %v3273_v0  ;;  %2665 = vmatpush3.bf16.msra.mxu1 %v2664_v49  ;;  %v1142_v49 = vld [vmem:[#allocation22 + $0x28] sm:$0xff] }
 0x31d   :  { %2666 = vmatprep.subr.bf16.mxu1 %v3273_v0 }
 0x31f   :  { %2596 = vmatpush3.bf16.msra.mxu0 %v2595_v52  ;;  %v2706_v52 = vpack.c.bf16 %v1142_v49, %v1141_v48  ;;  %v1357_v48 = vld [vmem:[#allocation25 + $0xa0] sm:$0xff] }
 0x320   :  { %2597 = vmatprep.subr.bf16.mxu0 %v3273_v0  ;;  %2668 = vmatpush3.bf16.msra.mxu1 %v2667_v55  ;;  %v1144_v55 = vld [vmem:[#allocation22 + $0x38] sm:$0xff]  ;;  %v2760_v51 = vpack.c.bf16 %v1358_v50, %v1357_v48 }
 0x321   :  { %v3770_v57 = vpop.f32.mrb[2].mxu1  ;;  %2669 = vmatprep.subr.bf16.mxu1 %v3273_v0  ;;  %v2710_v59 = vpack.c.bf16 %v1144_v55, %v1143_v54  ;;  %v1359_v55 = vld [vmem:[#allocation25 + $0xb0] sm:$0xff] }
 0x322   :  { %v2199_v58 = vpop.f32.mrb[3].mxu1 }
 0x323   :  { %2599 = vmatpush3.bf16.msra.mxu0 %v2598_v56  ;;  %v1161_v56 = vld [vmem:[#allocation22 + $0xc0] sm:$0xff]  ;;  %v1162_v58 = vld [vmem:[#allocation22 + $0xc8] sm:$0xff] }
 0x324   :  { %2624 = vmatprep.subr.bf16.mxu0 %v3273_v0  ;;  %2671 = vmatpush3.bf16.msra.mxu1 %v2670_v61  ;;  %v2712_v60 = vpack.c.bf16 %v1162_v58, %v1161_v56  ;;  %v1145_v61 = vld [vmem:[#allocation22 + $0x40] sm:$0xff]  ;;  %v1360_v56 = vld [vmem:[#allocation25 + $0xb8] sm:$0xff]  ;;  %v942_v58 = vld [vmem:[#allocation17 + $0x30] sm:$0xff] }
 0x325   :  { %2697 = vmatprep.subr.bf16.mxu1 %v2696_v5  ;;  %v1147_v5 = vld [vmem:[#allocation22 + $0x50] sm:$0xff] }
 0x326   :  { %2233 = vmatmul.mubr.f32.vlgmr.msra.gmra.mrb[4].mxu0 %v3703_v47  ;;  %v757_v47 = vld [vmem:[#allocation14 + $0x20] sm:$0xff] }
 0x327   :  { %2302 = vmatprep.mubr.msk.f32.mxu0 %vm3274_vm0, %v3275_v1  ;;  %2626 = vmatpush3.bf16.msra.mxu0 %v2625_v3  ;;  %v2631_v10 = vpack.c.bf16 %v758_v9, %v757_v47  ;;  %v2714_v3 = vpack.c.bf16 %v1146_v62, %v1145_v61  ;;  %v2718_v47 = vpack.c.bf16 %v1148_v6, %v1147_v5  ;;  %v1343_v62 = vld [vmem:[#allocation25 + $0x30] sm:$0xff]  ;;  %v944_v5 = vld [vmem:[#allocation17 + $0x40] sm:$0xff]  ;;  %v945_v6 = vld [vmem:[#allocation17 + $0x48] sm:$0xff] }
 0x328   :  { %2627 = vmatprep.subr.bf16.mxu0 %v3273_v0  ;;  %v2764_v61 = vpack.c.bf16 %v1360_v56, %v1359_v55 }
 0x32b   :  { %2629 = vmatpush3.bf16.msra.mxu0 %v2628_v8  ;;  %v1166_v8 = vld [vmem:[#allocation22 + $0xe8] sm:$0xff] }
 0x32c   :  { %2630 = vmatprep.subr.bf16.mxu0 %v3273_v0  ;;  %v2720_v9 = vpack.c.bf16 %v1166_v8, %v1165_v7  ;;  %v2766_v7 = vpack.c.bf16 %v1344_v63, %v1343_v62  ;;  %v1555_v62 = vld [vmem:[#allocation28 + $0x90] sm:$0xff]  ;;  %v1556_v63 = vld [vmem:[#allocation28 + $0x98] sm:$0xff] }
 0x32f   :  { %2632 = vmatpush3.bf16.msra.mxu0 %v2631_v10  ;;  %v1149_v10 = vld [vmem:[#allocation22 + $0x60] sm:$0xff] }
 0x330   :  { %2633 = vmatprep.subr.bf16.mxu0 %v3273_v0  ;;  %v2722_v15 = vpack.c.bf16 %v1150_v11, %v1149_v10  ;;  %v2685_v10 = vpack.c.bf16 %v945_v6, %v944_v5  ;;  %v1363_v11 = vld [vmem:[#allocation25 + $0xd0] sm:$0xff] }
 0x331   :  { %v1539_v6 = vld [vmem:[#allocation28 + $0x10] sm:$0xff] }
 0x333   :  { %2635 = vmatpush3.bf16.msra.mxu0 %v2634_v13  ;;  %v1168_v13 = vld [vmem:[#allocation22 + $0xf8] sm:$0xff] }
 0x334   :  { %2636 = vmatprep.subr.bf16.mxu0 %v3273_v0  ;;  %v2724_v16 = vpack.c.bf16 %v1168_v13, %v1167_v12  ;;  %v1364_v12 = vld [vmem:[#allocation25 + $0xd8] sm:$0xff]  ;;  %v946_v13 = vld [vmem:[#allocation17 + $0x50] sm:$0xff] }
 0x337   :  { %2638 = vmatpush3.bf16.msra.mxu0 %v2637_v18  ;;  %v1151_v18 = vld [vmem:[#allocation22 + $0x70] sm:$0xff] }
 0x338   :  { %2639 = vmatprep.subr.bf16.mxu0 %v3273_v0  ;;  %v2726_v20 = vpack.c.bf16 %v1152_v19, %v1151_v18  ;;  %v2772_v18 = vpack.c.bf16 %v1364_v12, %v1363_v11  ;;  %v1347_v19 = vld [vmem:[#allocation25 + $0x50] sm:$0xff]  ;;  %v1124_v11 = vld [vmem:[#allocation20 + $0x28] sm:$0xff] }
 0x33b   :  { %2641 = vmatpush3.bf16.msra.mxu0 %v2640_v21 }
 0x33c   :  { %2642 = vmatprep.subr.bf16.mxu0 %v3273_v0 }
 0x33f   :  { %2644 = vmatpush3.bf16.msra.mxu0 %v2643_v24 }
 0x340   :  { %2645 = vmatprep.subr.bf16.mxu0 %v3273_v0 }
 0x343   :  { %2647 = vmatpush3.bf16.msra.mxu0 %v2646_v27  ;;  %v936_v27 = vld [vmem:[#allocation17] sm:$0xff] }
 0x344   :  { %2672 = vmatprep.subr.bf16.mxu0 %v3273_v0 }
 0x3d9   :  { %v564_v31 = vpop.f32.mrb[2].mxu0  ;;  %v3788_v32 = vpop.f32.mrb[4].mxu1 }
 0x3da   :  { %v3790_v35 = vadd.f32 %v1744_v28, %v564_v31  ;;  %v2164_v36 = vpop.f32.mrb[3].mxu0  ;;  %v2269_v37 = vpop.f32.mrb[5].mxu1  ;;  %v937_v28 = vld [vmem:[#allocation17 + $0x8] sm:$0xff] }
 0x3db   :  { %v2673_v30 = vpack.c.bf16 %v937_v28, %v936_v27  ;;  %v1354_v31 = vld [vmem:[#allocation25 + $0x88] sm:$0xff]  ;;  %v938_v37 = vld [vmem:[#allocation17 + $0x10] sm:$0xff] }
 0x3dc   :  { %v568_v39 = vmax.f32 %v3790_v35, 0.0  ;;  %v2752_v36 = vpack.c.bf16 %v1354_v31, %v1353_v29  ;;  %v1366_v27 = vld [vmem:[#allocation25 + $0xe8] sm:$0xff]  ;;  %v1349_v29 = vld [vmem:[#allocation25 + $0x60] sm:$0xff]  ;;  %v1522_v35 = vld [vmem:[#allocation26 + $0x18] sm:$0xff] }
 0x3de   :  { %2338 = vmatmul.mubr.f32.vlgmr.msra.gmra.mrb[6].mxu1 %v568_v39 }
 0x3df   :  { %2699 = vmatpush3.bf16.msra.mxu1 %v2698_v38  ;;  %v939_v38 = vld [vmem:[#allocation17 + $0x18] sm:$0xff] }
 0x3e0   :  { %2701 = vmatprep.subr.bf16.mxu1 %v2700_v40  ;;  %v1355_v40 = vld [vmem:[#allocation25 + $0x90] sm:$0xff]  ;;  %v2676_v41 = vpack.c.bf16 %v939_v38, %v938_v37  ;;  %v1368_v37 = vld [vmem:[#allocation25 + $0xf8] sm:$0xff] }
 0x3e1   :  { %v2756_v44 = vpack.c.bf16 %v1356_v42, %v1355_v40  ;;  %v1351_v40 = vld [vmem:[#allocation25 + $0x70] sm:$0xff] }
 0x3e3   :  { %2703 = vmatpush3.bf16.msra.mxu1 %v2702_v45  ;;  %v940_v45 = vld [vmem:[#allocation17 + $0x20] sm:$0xff] }
 0x3e4   :  { %2705 = vmatprep.subr.bf16.mxu1 %v2704_v46  ;;  %v941_v46 = vld [vmem:[#allocation17 + $0x28] sm:$0xff] }
 0x3e5   :  { %v2679_v54 = vpack.c.bf16 %v941_v46, %v940_v45 }
 0x3e7   :  { %2707 = vmatpush3.bf16.msra.mxu1 %v2706_v52  ;;  %v1341_v52 = vld [vmem:[#allocation25 + $0x20] sm:$0xff] }
 0x3e8   :  { %2709 = vmatprep.subr.bf16.mxu1 %v2708_v53  ;;  %v1342_v53 = vld [vmem:[#allocation25 + $0x28] sm:$0xff] }
 0x3eb   :  { %2711 = vmatpush3.bf16.msra.mxu1 %v2710_v59  ;;  %v943_v59 = vld [vmem:[#allocation17 + $0x38] sm:$0xff] }
 0x3ec   :  { %2713 = vmatprep.subr.bf16.mxu1 %v2712_v60  ;;  %v2762_v60 = vpack.c.bf16 %v1342_v53, %v1341_v52  ;;  %v2682_v2 = vpack.c.bf16 %v943_v59, %v942_v58  ;;  %v1119_v53 = vld [vmem:[#allocation20] sm:$0xff] }
 0x3ed   :  { %v1537_v59 = vld [vmem:[#allocation28] sm:$0xff] }
 0x3ef   :  { %2715 = vmatpush3.bf16.msra.mxu1 %v2714_v3  ;;  %v1361_v3 = vld [vmem:[#allocation25 + $0xc0] sm:$0xff] }
 0x3f0   :  { %2717 = vmatprep.subr.bf16.mxu1 %v2716_v4  ;;  %v1362_v4 = vld [vmem:[#allocation25 + $0xc8] sm:$0xff] }
 0x3f1   :  { %v2768_v8 = vpack.c.bf16 %v1362_v4, %v1361_v3  ;;  %v1121_v3 = vld [vmem:[#allocation20 + $0x10] sm:$0xff]  ;;  %v1122_v4 = vld [vmem:[#allocation20 + $0x18] sm:$0xff] }
 0x3f3   :  { %2719 = vmatpush3.bf16.msra.mxu1 %v2718_v47  ;;  %v1345_v47 = vld [vmem:[#allocation25 + $0x40] sm:$0xff] }
 0x3f4   :  { %2721 = vmatprep.subr.bf16.mxu1 %v2720_v9  ;;  %v1346_v9 = vld [vmem:[#allocation25 + $0x48] sm:$0xff] }
 0x3f7   :  { %2723 = vmatpush3.bf16.msra.mxu1 %v2722_v15  ;;  %v947_v15 = vld [vmem:[#allocation17 + $0x58] sm:$0xff] }
 0x3f8   :  { %2725 = vmatprep.subr.bf16.mxu1 %v2724_v16  ;;  %v2770_v16 = vpack.c.bf16 %v1346_v9, %v1345_v47  ;;  %v1557_v47 = vld [vmem:[#allocation28 + $0xa0] sm:$0xff]  ;;  %v1558_v9 = vld [vmem:[#allocation28 + $0xa8] sm:$0xff] }
 0x3f9   :  { %v739_v21 = vpop.f32.mrb[4].mxu0 }
 0x3fa   :  { %v740_v23 = vadd.f32 %v739_v21, %v3770_v57  ;;  %v2234_v24 = vpop.f32.mrb[5].mxu0  ;;  %v2754_v57 = vpack.c.bf16 %v1338_v34, %v1337_v33  ;;  %v2688_v21 = vpack.c.bf16 %v947_v15, %v946_v13  ;;  %v950_v33 = vld [vmem:[#allocation17 + $0x70] sm:$0xff]  ;;  %v951_v34 = vld [vmem:[#allocation17 + $0x78] sm:$0xff]  ;;  %v2816_v13 = vpack.c.bf16 %v1558_v9, %v1557_v47  ;;  %v1541_v15 = vld [vmem:[#allocation28 + $0x20] sm:$0xff] }
 0x3fb   :  { %2727 = vmatpush3.bf16.msra.mxu1 %v2726_v20  ;;  %v1348_v20 = vld [vmem:[#allocation25 + $0x58] sm:$0xff]  ;;  %v1321_v9 = vld [vmem:[#allocation23 + $0x10] sm:$0xff] }
 0x3fc   :  { %v750_v25 = vadd.f32 %v1745_v22, %v740_v23  ;;  %2753 = vmatprep.subr.bf16.mxu1 %v2752_v36  ;;  %v948_v22 = vld [vmem:[#allocation17 + $0x60] sm:$0xff]  ;;  %v949_v23 = vld [vmem:[#allocation17 + $0x68] sm:$0xff]  ;;  %v2774_v24 = vpack.c.bf16 %v1348_v20, %v1347_v19  ;;  %v2694_v36 = vpack.c.bf16 %v951_v34, %v950_v33  ;;  %v1559_v19 = vld [vmem:[#allocation28 + $0xb0] sm:$0xff] }
 0x3fd   :  { %v1125_v20 = vld [vmem:[#allocation20 + $0x30] sm:$0xff]  ;;  %v1545_v34 = vld [vmem:[#allocation28 + $0x40] sm:$0xff] }
 0x3fe   :  { %v751_v26 = vmax.f32 %v750_v25, 0.0  ;;  %v2691_v25 = vpack.c.bf16 %v949_v23, %v948_v22 }
 0x400   :  { %2303 = vmatmul.mubr.f32.vlgmr.msra.gmra.mrb[6].mxu0 %v751_v26  ;;  %1233 = vmatprep.mubr.f32.mxu1 %v751_v26  ;;  %v1365_v26 = vld [vmem:[#allocation25 + $0xe0] sm:$0xff] }
 0x401   :  { %1234 = vmatmul.mubr.f32.vlgmr.msra.gmra.mrb[8].mxu1 %v3721_v17  ;;  %2372 = vmatprep.mubr.msk.f32.mxu0 %vm3274_vm0, %v3275_v1  ;;  %v1340_v17 = vld [vmem:[#allocation25 + $0x18] sm:$0xff]  ;;  %v2776_v28 = vpack.c.bf16 %v1366_v27, %v1365_v26  ;;  %v1561_v27 = vld [vmem:[#allocation28 + $0xc0] sm:$0xff] }
 0x402   :  { %2674 = vmatpush3.bf16.msra.mxu0 %v2673_v30  ;;  %2755 = vmatpush3.bf16.msra.mxu1 %v2754_v57  ;;  %v2758_v49 = vpack.c.bf16 %v1340_v17, %v1339_v43  ;;  %v1350_v30 = vld [vmem:[#allocation25 + $0x68] sm:$0xff]  ;;  %v1367_v57 = vld [vmem:[#allocation25 + $0xf0] sm:$0xff]  ;;  %v1553_v43 = vld [vmem:[#allocation28 + $0x80] sm:$0xff] }
 0x403   :  { %2675 = vmatprep.subr.bf16.mxu0 %v3273_v0  ;;  %2757 = vmatprep.subr.bf16.mxu1 %v2756_v44  ;;  %v2778_v31 = vpack.c.bf16 %v1350_v30, %v1349_v29  ;;  %v2780_v38 = vpack.c.bf16 %v1368_v37, %v1367_v57  ;;  %v1554_v17 = vld [vmem:[#allocation28 + $0x88] sm:$0xff]  ;;  %v1127_v29 = vld [vmem:[#allocation20 + $0x40] sm:$0xff]  ;;  %v1563_v37 = vld [vmem:[#allocation28 + $0xd0] sm:$0xff] }
 0x404   :  { %v2808_v44 = vpack.c.bf16 %v1554_v17, %v1553_v43  ;;  %v1128_v30 = vld [vmem:[#allocation20 + $0x48] sm:$0xff]  ;;  %v1547_v17 = vld [vmem:[#allocation28 + $0x50] sm:$0xff] }
 0x405   :  { %v2741_v57 = vpack.c.bf16 %v1128_v30, %v1127_v29  ;;  %v1334_v29 = vld [vmem:[#allocation23 + $0x78] sm:$0xff] }
 0x406   :  { %2677 = vmatpush3.bf16.msra.mxu0 %v2676_v41  ;;  %2759 = vmatpush3.bf16.msra.mxu1 %v2758_v49  ;;  %v1352_v41 = vld [vmem:[#allocation25 + $0x78] sm:$0xff]  ;;  %v1746_v49 = vld [vmem:[%s3890_s11] ss:$0 sm:$0xff] }
 0x407   :  { %2678 = vmatprep.subr.bf16.mxu0 %v3273_v0  ;;  %2761 = vmatprep.subr.bf16.mxu1 %v2760_v51  ;;  %v2782_v42 = vpack.c.bf16 %v1352_v41, %v1351_v40  ;;  %v1129_v40 = vld [vmem:[#allocation20 + $0x50] sm:$0xff]  ;;  %v1130_v41 = vld [vmem:[#allocation20 + $0x58] sm:$0xff] }
 0x40a   :  { %2680 = vmatpush3.bf16.msra.mxu0 %v2679_v54  ;;  %2763 = vmatpush3.bf16.msra.mxu1 %v2762_v60  ;;  %v1120_v54 = vld [vmem:[#allocation20 + $0x8] sm:$0xff] }
 0x40b   :  { %2681 = vmatprep.subr.bf16.mxu0 %v3273_v0  ;;  %2765 = vmatprep.subr.bf16.mxu1 %v2764_v61  ;;  %v1538_v60 = vld [vmem:[#allocation28 + $0x8] sm:$0xff]  ;;  %v2729_v61 = vpack.c.bf16 %v1120_v54, %v1119_v53  ;;  %v1134_v53 = vld [vmem:[#allocation20 + $0x78] sm:$0xff] }
 0x40c   :  { %v2810_v5 = vpack.c.bf16 %v1538_v60, %v1537_v59  ;;  %v1566_v59 = vld [vmem:[#allocation28 + $0xe8] sm:$0xff] }
 0x40e   :  { %2683 = vmatpush3.bf16.msra.mxu0 %v2682_v2  ;;  %2767 = vmatpush3.bf16.msra.mxu1 %v2766_v7  ;;  %v1540_v7 = vld [vmem:[#allocation28 + $0x18] sm:$0xff] }
 0x40f   :  { %2684 = vmatprep.subr.bf16.mxu0 %v3273_v0  ;;  %2769 = vmatprep.subr.bf16.mxu1 %v2768_v8  ;;  %v2732_v8 = vpack.c.bf16 %v1122_v4, %v1121_v3  ;;  %v2814_v12 = vpack.c.bf16 %v1540_v7, %v1539_v6  ;;  %v1568_v3 = vld [vmem:[#allocation28 + $0xf8] sm:$0xff]  ;;  %v1319_v7 = vld [vmem:[#allocation23] sm:$0xff] }
 0x412   :  { %2686 = vmatpush3.bf16.msra.mxu0 %v2685_v10  ;;  %2771 = vmatpush3.bf16.msra.mxu1 %v2770_v16  ;;  %v1123_v10 = vld [vmem:[#allocation20 + $0x20] sm:$0xff]  ;;  %v1542_v16 = vld [vmem:[#allocation28 + $0x28] sm:$0xff] }
 0x413   :  { %2687 = vmatprep.subr.bf16.mxu0 %v3273_v0  ;;  %2773 = vmatprep.subr.bf16.mxu1 %v2772_v18  ;;  %v2735_v18 = vpack.c.bf16 %v1124_v11, %v1123_v10  ;;  %v2818_v22 = vpack.c.bf16 %v1542_v16, %v1541_v15  ;;  %v1322_v10 = vld [vmem:[#allocation23 + $0x18] sm:$0xff]  ;;  %v1325_v16 = vld [vmem:[#allocation23 + $0x30] sm:$0xff] }
 0x414   :  { %v2788_v11 = vpack.c.bf16 %v1322_v10, %v1321_v9  ;;  %v1749_v10 = vld [vmem:[%s3899_s20] ss:$0 sm:$0xff] }
 0x416   :  { %2689 = vmatpush3.bf16.msra.mxu0 %v2688_v21  ;;  %2775 = vmatpush3.bf16.msra.mxu1 %v2774_v24  ;;  %v1126_v21 = vld [vmem:[#allocation20 + $0x38] sm:$0xff]  ;;  %v1543_v24 = vld [vmem:[#allocation28 + $0x30] sm:$0xff] }
 0x417   :  { %2690 = vmatprep.subr.bf16.mxu0 %v3273_v0  ;;  %2777 = vmatprep.subr.bf16.mxu1 %v2776_v28  ;;  %v2738_v26 = vpack.c.bf16 %v1126_v21, %v1125_v20  ;;  %v1562_v28 = vld [vmem:[#allocation28 + $0xc8] sm:$0xff] }
 0x418   :  { %v2824_v33 = vpack.c.bf16 %v1562_v28, %v1561_v27  ;;  %v1328_v20 = vld [vmem:[#allocation23 + $0x48] sm:$0xff]  ;;  %v1333_v28 = vld [vmem:[#allocation23 + $0x70] sm:$0xff] }
 0x419   :  { %v2806_v30 = vpack.c.bf16 %v1334_v29, %v1333_v28 }
 0x41a   :  { %2692 = vmatpush3.bf16.msra.mxu0 %v2691_v25  ;;  %2779 = vmatpush3.bf16.msra.mxu1 %v2778_v31  ;;  %v1544_v25 = vld [vmem:[#allocation28 + $0x38] sm:$0xff] }
 0x41b   :  { %2693 = vmatprep.subr.bf16.mxu0 %v3273_v0  ;;  %2781 = vmatprep.subr.bf16.mxu1 %v2780_v38  ;;  %v2822_v31 = vpack.c.bf16 %v1544_v25, %v1543_v24  ;;  %v1564_v38 = vld [vmem:[#allocation28 + $0xd8] sm:$0xff]  ;;  %v1331_v25 = vld [vmem:[#allocation23 + $0x60] sm:$0xff] }
 0x41c   :  { %v2828_v43 = vpack.c.bf16 %v1564_v38, %v1563_v37 }
 0x41e   :  { %2695 = vmatpush3.bf16.msra.mxu0 %v2694_v36  ;;  %2783 = vmatpush3.bf16.msra.mxu1 %v2782_v42  ;;  %v1546_v36 = vld [vmem:[#allocation28 + $0x48] sm:$0xff] }
 0x41f   :  { %2728 = vmatprep.subr.bf16.mxu0 %v3273_v0  ;;  %2809 = vmatprep.subr.bf16.mxu1 %v2808_v44  ;;  %v2826_v42 = vpack.c.bf16 %v1546_v36, %v1545_v34  ;;  %v1548_v44 = vld [vmem:[#allocation28 + $0x58] sm:$0xff] }
 0x4b1   :  { %v3810_v45 = vpop.f32.mrb[6].mxu1 }
 0x4b2   :  { %v2339_v46 = vpop.f32.mrb[7].mxu1 }
 0x4b3   :  { %v2744_v46 = vpack.c.bf16 %v1130_v41, %v1129_v40 }
 0x4d3   :  { %v922_v48 = vpop.f32.mrb[6].mxu0 }
 0x4d4   :  { %v923_v50 = vadd.f32 %v922_v48, %v3788_v32  ;;  %v2304_v51 = vpop.f32.mrb[7].mxu0  ;;  %v1936_v52 = vpop.f32.mrb[8].mxu1  ;;  %v2812_v32 = vpack.c.bf16 %v1556_v63, %v1555_v62  ;;  %v1131_v48 = vld [vmem:[#allocation20 + $0x60] sm:$0xff]  ;;  %v1550_v62 = vld [vmem:[#allocation28 + $0x68] sm:$0xff] }
 0x4d5   :  { %v1937_v55 = vpop.f32.mrb[9].mxu1 }
 0x4d6   :  { %v933_v56 = vadd.f32 %v1746_v49, %v923_v50  ;;  %v3816_v58 = vadd.f32 %v1937_v55, %v1936_v52  ;;  %v1132_v49 = vld [vmem:[#allocation20 + $0x68] sm:$0xff]  ;;  %v2830_v50 = vpack.c.bf16 %v1548_v44, %v1547_v17  ;;  %v1133_v52 = vld [vmem:[#allocation20 + $0x70] sm:$0xff]  ;;  %v2885_v55 = vld [vmem:[%s3929_s0] sm:$0xff] }
 0x4d7   :  { %v2747_v51 = vpack.c.bf16 %v1132_v49, %v1131_v48  ;;  %v2750_v54 = vpack.c.bf16 %v1134_v53, %v1133_v52  ;;  %v1519_v48 = vld [vmem:[#allocation26] sm:$0xff]  ;;  %v1520_v49 = vld [vmem:[#allocation26 + $0x8] sm:$0xff] }
 0x4d8   :  { %v934_v2 = vmax.f32 %v933_v56, 0.0  ;;  %v1565_v56 = vld [vmem:[#allocation28 + $0xe0] sm:$0xff]  ;;  %v1524_v53 = vld [vmem:[#allocation26 + $0x28] sm:$0xff] }
 0x4d9   :  { %v2832_v60 = vpack.c.bf16 %v1566_v59, %v1565_v56  ;;  %v1523_v52 = vld [vmem:[#allocation26 + $0x20] sm:$0xff]  ;;  %v1528_v59 = vld [vmem:[#allocation26 + $0x48] sm:$0xff] }
 0x4da   :  { %2373 = vmatmul.mubr.f32.vlgmr.msra.gmra.mrb[8].mxu0 %v934_v2  ;;  %1433 = vmatprep.mubr.f32.mxu1 %v934_v2  ;;  %v1567_v2 = vld [vmem:[#allocation28 + $0xf0] sm:$0xff] }
 0x4db   :  { %2730 = vmatpush3.bf16.msra.mxu0 %v2729_v61  ;;  %1434 = vmatmul.mubr.f32.vlgmr.msra.gmra.mrb[10].mxu1 %v3749_v14  ;;  %v1560_v14 = vld [vmem:[#allocation28 + $0xb8] sm:$0xff]  ;;  %v1549_v61 = vld [vmem:[#allocation28 + $0x60] sm:$0xff]  ;;  %v2836_v4 = vpack.c.bf16 %v1568_v3, %v1567_v2  ;;  %v1532_v3 = vld [vmem:[#allocation26 + $0x68] sm:$0xff] }
 0x4dc   :  { %2731 = vmatprep.subr.bf16.mxu0 %v3273_v0  ;;  %2407 = vmatprep.mubr.msk.f32.mxu0 %vm3274_vm0, %v3275_v1  ;;  %v2820_v23 = vpack.c.bf16 %v1560_v14, %v1559_v19  ;;  %v2834_v63 = vpack.c.bf16 %v1550_v62, %v1549_v61  ;;  %v1327_v14 = vld [vmem:[#allocation23 + $0x40] sm:$0xff]  ;;  %v1529_v61 = vld [vmem:[#allocation26 + $0x50] sm:$0xff]  ;;  %v1530_v62 = vld [vmem:[#allocation26 + $0x58] sm:$0xff] }
 0x4dd   :  { %2811 = vmatpush3.bf16.msra.mxu1 %v2810_v5  ;;  %v1551_v5 = vld [vmem:[#allocation28 + $0x70] sm:$0xff]  ;;  %v2797_v21 = vpack.c.bf16 %v1328_v20, %v1327_v14  ;;  %v1531_v2 = vld [vmem:[#allocation26 + $0x60] sm:$0xff] }
 0x4de   :  { %2813 = vmatprep.subr.bf16.mxu1 %v2812_v32  ;;  %v1552_v32 = vld [vmem:[#allocation28 + $0x78] sm:$0xff] }
 0x4df   :  { %2733 = vmatpush3.bf16.msra.mxu0 %v2732_v8  ;;  %v2838_v6 = vpack.c.bf16 %v1552_v32, %v1551_v5  ;;  %v1320_v8 = vld [vmem:[#allocation23 + $0x8] sm:$0xff]  ;;  %v1533_v5 = vld [vmem:[#allocation26 + $0x70] sm:$0xff]  ;;  %v1534_v32 = vld [vmem:[#allocation26 + $0x78] sm:$0xff] }
 0x4e0   :  { %2734 = vmatprep.subr.bf16.mxu0 %v3273_v0  ;;  %v2785_v47 = vpack.c.bf16 %v1320_v8, %v1319_v7 }
 0x4e1   :  { %2815 = vmatpush3.bf16.msra.mxu1 %v2814_v12  ;;  %v1323_v12 = vld [vmem:[#allocation23 + $0x20] sm:$0xff] }
 0x4e2   :  { %2817 = vmatprep.subr.bf16.mxu1 %v2816_v13  ;;  %v1324_v13 = vld [vmem:[#allocation23 + $0x28] sm:$0xff] }
 0x4e3   :  { %2736 = vmatpush3.bf16.msra.mxu0 %v2735_v18  ;;  %v2791_v15 = vpack.c.bf16 %v1324_v13, %v1323_v12  ;;  %v1326_v18 = vld [vmem:[#allocation23 + $0x38] sm:$0xff] }
 0x4e4   :  { %2737 = vmatprep.subr.bf16.mxu0 %v3273_v0  ;;  %v2794_v19 = vpack.c.bf16 %v1326_v18, %v1325_v16 }
 0x4e5   :  { %2819 = vmatpush3.bf16.msra.mxu1 %v2818_v22  ;;  %v1329_v22 = vld [vmem:[#allocation23 + $0x50] sm:$0xff] }
 0x4e6   :  { %2821 = vmatprep.subr.bf16.mxu1 %v2820_v23  ;;  %v1330_v23 = vld [vmem:[#allocation23 + $0x58] sm:$0xff] }
 0x4e7   :  { %2739 = vmatpush3.bf16.msra.mxu0 %v2738_v26  ;;  %v2800_v24 = vpack.c.bf16 %v1330_v23, %v1329_v22  ;;  %v1332_v26 = vld [vmem:[#allocation23 + $0x68] sm:$0xff] }
 0x4e8   :  { %2740 = vmatprep.subr.bf16.mxu0 %v3273_v0  ;;  %v2803_v27 = vpack.c.bf16 %v1332_v26, %v1331_v25 }
 0x4e9   :  { %2823 = vmatpush3.bf16.msra.mxu1 %v2822_v31 }
 0x4ea   :  { %2825 = vmatprep.subr.bf16.mxu1 %v2824_v33  ;;  %v1747_v33 = vld [vmem:[%s3893_s14] ss:$0 sm:$0xff] }
 0x4eb   :  { %2742 = vmatpush3.bf16.msra.mxu0 %v2741_v57 }
 0x4ec   :  { %2743 = vmatprep.subr.bf16.mxu0 %v3273_v0 }
 0x4ed   :  { %2827 = vmatpush3.bf16.msra.mxu1 %v2826_v42 }
 0x4ee   :  { %2829 = vmatprep.subr.bf16.mxu1 %v2828_v43  ;;  %v1748_v43 = vld [vmem:[%s3896_s17] ss:$0 sm:$0xff] }
 0x4ef   :  { %2745 = vmatpush3.bf16.msra.mxu0 %v2744_v46 }
 0x4f0   :  { %2746 = vmatprep.subr.bf16.mxu0 %v3273_v0 }
 0x4f1   :  { %2831 = vmatpush3.bf16.msra.mxu1 %v2830_v50  ;;  %v1521_v50 = vld [vmem:[#allocation26 + $0x10] sm:$0xff] }
 0x4f2   :  { %2833 = vmatprep.subr.bf16.mxu1 %v2832_v60 }
 0x4f3   :  { %2748 = vmatpush3.bf16.msra.mxu0 %v2747_v51  ;;  %v2841_v51 = vpack.c.bf16 %v1520_v49, %v1519_v48 }
 0x4f4   :  { %2749 = vmatprep.subr.bf16.mxu0 %v3273_v0 }
 0x4f5   :  { %2835 = vmatpush3.bf16.msra.mxu1 %v2834_v63  ;;  %v2856_v63 = vpack.c.bf16 %v1530_v62, %v1529_v61 }
 0x4f6   :  { %2837 = vmatprep.subr.bf16.mxu1 %v2836_v4  ;;  %v2859_v4 = vpack.c.bf16 %v1532_v3, %v1531_v2 }
 0x4f7   :  { %2751 = vmatpush3.bf16.msra.mxu0 %v2750_v54  ;;  %v1525_v54 = vld [vmem:[#allocation26 + $0x30] sm:$0xff] }
 0x4f8   :  { %2784 = vmatprep.subr.bf16.mxu0 %v3273_v0 }
 0x4f9   :  { %2839 = vmatpush3.bf16.msra.mxu1 %v2838_v6  ;;  %v2862_v6 = vpack.c.bf16 %v1534_v32, %v1533_v5 }
 0x4fa   :  { %2408 = vmatmul.mubr.f32.vlgmr.msra.gmra.mrb[10].mxu0 %v2885_v55  ;;  %v1526_v55 = vld [vmem:[#allocation26 + $0x38] sm:$0xff] }
 0x4fb   :  { %2442 = vmatprep.mubr.msk.f32.mxu0 %vm3274_vm0, %v3275_v1  ;;  %2786 = vmatpush3.bf16.msra.mxu0 %v2785_v47  ;;  %v2850_v56 = vpack.c.bf16 %v1526_v55, %v1525_v54 }
 0x4fc   :  { %2787 = vmatprep.subr.bf16.mxu0 %v3273_v0 }
 0x4ff   :  { %2789 = vmatpush3.bf16.msra.mxu0 %v2788_v11 }
 0x500   :  { %2790 = vmatprep.subr.bf16.mxu0 %v3273_v0 }
 0x503   :  { %2792 = vmatpush3.bf16.msra.mxu0 %v2791_v15 }
 0x504   :  { %2793 = vmatprep.subr.bf16.mxu0 %v3273_v0 }
 0x507   :  { %2795 = vmatpush3.bf16.msra.mxu0 %v2794_v19 }
 0x508   :  { %2796 = vmatprep.subr.bf16.mxu0 %v3273_v0 }
 0x50b   :  { %2798 = vmatpush3.bf16.msra.mxu0 %v2797_v21 }
 0x50c   :  { %2799 = vmatprep.subr.bf16.mxu0 %v3273_v0 }
 0x50f   :  { %2801 = vmatpush3.bf16.msra.mxu0 %v2800_v24 }
 0x510   :  { %2802 = vmatprep.subr.bf16.mxu0 %v3273_v0 }
 0x513   :  { %2804 = vmatpush3.bf16.msra.mxu0 %v2803_v27 }
 0x514   :  { %2805 = vmatprep.subr.bf16.mxu0 %v3273_v0 }
 0x517   :  { %2807 = vmatpush3.bf16.msra.mxu0 %v2806_v30 }
 0x518   :  { %2840 = vmatprep.subr.bf16.mxu0 %v3273_v0 }
 0x5ad   :  { %v1105_v31 = vpop.f32.mrb[8].mxu0 }
 0x5ae   :  { %v1106_v34 = vadd.f32 %v1105_v31, %v3810_v45  ;;  %v2374_v36 = vpop.f32.mrb[9].mxu0  ;;  %v1988_v57 = vpop.f32.mrb[10].mxu1 }
 0x5af   :  { %v1989_v37 = vpop.f32.mrb[11].mxu1 }
 0x5b0   :  { %v1116_v38 = vadd.f32 %v1747_v33, %v1106_v34  ;;  %v1990_v40 = vadd.f32 %v1989_v37, %v1988_v57 }
 0x5b2   :  { %v1117_v41 = vmax.f32 %v1116_v38, 0.0 }
 0x5b4   :  { %1633 = vmatprep.mubr.f32.mxu1 %v1117_v41 }
 0x5b5   :  { %1634 = vmatmul.mubr.f32.vlgmr.msra.gmra.mrb[12].mxu1 %v568_v39  ;;  %v2844_v39 = vpack.c.bf16 %v1522_v35, %v1521_v50 }
 0x5cd   :  { %v1305_v42 = vpop.f32.mrb[10].mxu0 }
 0x5ce   :  { %v1306_v17 = vadd.f32 %v3816_v58, %v1305_v42  ;;  %v2409_v44 = vpop.f32.mrb[11].mxu0  ;;  %v2847_v58 = vpack.c.bf16 %v1524_v53, %v1523_v52 }
 0x5d0   :  { %v1316_v46 = vadd.f32 %v1748_v43, %v1306_v17 }
 0x5d2   :  { %v1317_v45 = vmax.f32 %v1316_v46, 0.0 }
 0x5d4   :  { %2443 = vmatmul.mubr.f32.vlgmr.msra.gmra.mrb[12].mxu0 %v1317_v45 }
 0x5d5   :  { %2477 = vmatprep.mubr.msk.f32.mxu0 %vm3274_vm0, %v3275_v1  ;;  %2842 = vmatpush3.bf16.msra.mxu0 %v2841_v51  ;;  %v1527_v1 = vld [vmem:[#allocation26 + $0x40] sm:$0xff] }
 0x5d6   :  { %2843 = vmatprep.subr.bf16.mxu0 %v3273_v0  ;;  %v2853_v60 = vpack.c.bf16 %v1528_v59, %v1527_v1 }
 0x5d9   :  { %2845 = vmatpush3.bf16.msra.mxu0 %v2844_v39 }
 0x5da   :  { %2846 = vmatprep.subr.bf16.mxu0 %v3273_v0 }
 0x5dd   :  { %2848 = vmatpush3.bf16.msra.mxu0 %v2847_v58 }
 0x5de   :  { %2849 = vmatprep.subr.bf16.mxu0 %v3273_v0 }
 0x5e1   :  { %2851 = vmatpush3.bf16.msra.mxu0 %v2850_v56 }
 0x5e2   :  { %2852 = vmatprep.subr.bf16.mxu0 %v3273_v0 }
 0x5e5   :  { %2854 = vmatpush3.bf16.msra.mxu0 %v2853_v60 }
 0x5e6   :  { %2855 = vmatprep.subr.bf16.mxu0 %v3273_v0 }
 0x5e9   :  { %2857 = vmatpush3.bf16.msra.mxu0 %v2856_v63 }
 0x5ea   :  { %2858 = vmatprep.subr.bf16.mxu0 %v3273_v0 }
 0x5ed   :  { %2860 = vmatpush3.bf16.msra.mxu0 %v2859_v4 }
 0x5ee   :  { %2861 = vmatprep.subr.bf16.mxu0 %v3273_v0  ;;  %v1750_v0 = vld [vmem:[%s3934_s15] ss:$0 sm:$0xff] }
 0x5f1   :  { %2863 = vmatpush3.bf16.msra.mxu0 %v2862_v6 }
 0x688   :  { %v2040_v7 = vpop.f32.mrb[12].mxu1 }
 0x689   :  { %v2041_v8 = vpop.f32.mrb[13].mxu1 }
 0x68a   :  { %v2042_v47 = vadd.f32 %v2041_v8, %v2040_v7 }
 0x6a7   :  { %v1505_v9 = vpop.f32.mrb[12].mxu0 }
 0x6a8   :  { %v1506_v11 = vadd.f32 %v1990_v40, %v1505_v9  ;;  %v2444_v12 = vpop.f32.mrb[13].mxu0 }
 0x6aa   :  { %v1516_v13 = vadd.f32 %v1749_v10, %v1506_v11 }
 0x6ac   :  { %v1517_v15 = vmax.f32 %v1516_v13, 0.0 }
 0x6ae   :  { %2478 = vmatmul.mubr.f32.vlgmr.msra.gmra.mrb[14].mxu0 %v1517_v15 }
 0x781   :  { %v1705_v16 = vpop.f32.mrb[14].mxu0 }
 0x782   :  { %v1706_v18 = vadd.f32 %v2042_v47, %v1705_v16  ;;  %v2479_v19 = vpop.f32.mrb[15].mxu0 }
 0x784   :  { %v1716_v14 = vadd.f32 %v1750_v0, %v1706_v18 }
 0x786   :  { %v1717_v20 = vmax.f32 %v1716_v14, 0.0 }
 0x788   :  { %1719 = vst [vmem:[#allocation29] sm:$0xff] %v1717_v20 }
 0x789   :  { %3227 = shalt.err (!%p3224_p12)
}
 0x78a   :  { %s3935_s0 = sld [smem:[#allocation50_spill]] }
 0x790   :  { %s3228_s16 = scalar_lea.hbm %s3935_s0, 128 }
 0x791   :  { %p3229_p13 = scmp.ne.s32.totalorder %s3935_s0, %s3228_s16  ;;  %p3232_p0 = scmp.lt.u32.totalorder %s3228_s16, %s3935_s0 }
 0x793   :  { %p3234_p1 = pnand %p3232_p0, %p3229_p13 }
 0x795   :  { %3237 = shalt.err (!%p3234_p1)
}
 0x796   :  { %1729 = dma.vmem_to_hbm [thread:$0]  %s1727_s23, 128, %s3935_s0, [#allocation7]  }
 0x797   :  { %3254 = dma.done.wait [#allocation7], 128  }
 0x798   :  { %3255 = vsyncadd [#allocation7], 4294967168 }
 0x799   :  { %1733 = vsyncpa [#allocation6], 1 }
 0x79a   :  { %1734 = vsyncpa [#allocation9], 1 }
 0x79b   :  { %1735 = vsyncpa [#allocation12], 1 }
 0x79c   :  { %1736 = vsyncpa [#allocation15], 1 }
 0x79d   :  { %1737 = vsyncpa [#allocation18], 1 }
 0x79e   :  { %1738 = vsyncpa [#allocation21], 1 }
 0x79f   :  { %1739 = vsyncpa [#allocation24], 1 }
 0x7a0   :  { %1740 = vsyncpa [#allocation27], 1 }
 0x7a1   :  { %1741 = vsyncpa [#allocation7], 1 }

</bundles_post_ra>
